<compile_context>
chip_gen: v7x
topology: tpu7x:2x2x1
jax: 0.10.0
libtpu: 0.0.40
codegen_flags: <defaults>
</compile_context>

<pallas_src>
import jax
import jax.numpy as jnp
from jax import lax
from jax.experimental import pallas as pl
from jax.experimental.pallas import tpu as pltpu


# TODO(synk): torch.nn.GELU defaults to the exact erf form; we use the tanh
# approximation (same formula in kernel and reference, ~1e-3 difference).
def _gelu(x):
    return jax.nn.gelu(x, approximate=True)


def _pick_q_tile(n, max_q_tile=512):
    """Largest convenient query tile (<= max_q_tile) that evenly divides N."""
    for t in (512, 256, 128, 64, 32, 16, 8):
        if t <= max_q_tile and t <= n and n % t == 0:
            return t
    return n  # fall back to the full (untiled) query axis


def make_lora_attention(dim, num_heads, rank, compute_dtype=jnp.bfloat16,
                        max_q_tile=512):
    C, R, H = dim, rank, num_heads
    assert C % H == 0
    HD = C // H
    scale = HD ** (-0.5)

    def forward(x, wa_qkv, wb_qkv, wa_p, ba_p, wb_p, bb_p):
        B, N, C_in = x.shape
        assert C_in == C
        TQ = _pick_q_tile(N, max_q_tile)
        n_qt = N // TQ
        cd = compute_dtype

        def kernel(x_ref, wa_ref, wbq_ref, wbk_ref, wbv_ref,
                   wpa_ref, bpa_ref, wpb_ref, bpb_ref, o_ref,
                   h_sc, k_sc, v_sc, ctx_sc):
            qt = pl.program_id(1)

            # ---- qkv LoRA-A hidden + K / V projection: once per batch
            # element (query-tile 0). Scratch persists across the sequential
            # ("arbitrary") q-tile axis.
            @pl.when(qt == 0)
            def _():
                xf = x_ref[0]                                       # (N, C)
                h = _gelu(jnp.dot(xf, wa_ref[...],
                                  preferred_element_type=jnp.float32))
                h = h.astype(h_sc.dtype)                            # (N, R)
                h_sc[...] = h
                k_sc[...] = jnp.dot(h, wbk_ref[...],
                                    preferred_element_type=jnp.float32
                                    ).astype(k_sc.dtype)
                v_sc[...] = jnp.dot(h, wbv_ref[...],
                                    preferred_element_type=jnp.float32
                                    ).astype(v_sc.dtype)

            # ---- Q projection for this query tile (scale folded into Wb_q);
            # the shared LoRA-A hidden is reused from scratch (no recompute).
            start = qt * TQ
            if TQ % 8 == 0:
                start = pl.multiple_of(start, TQ)
            hq = h_sc[pl.ds(start, TQ), :]                          # (TQ, R)
            q = jnp.dot(hq, wbq_ref[...],
                        preferred_element_type=jnp.float32).astype(cd)

            # ---- Per-head attention.  Static loop (H is small); head outputs
            # go straight into the (TQ, C) context scratch, so no concatenate
            # and per-head temporaries die at the store.
            # NOTE: with head_dim < 128 the per-head store is a masked vst;
            # packing two heads per 128-lane slab would remove that.
            for hh in range(H):
                sl = slice(hh * HD, (hh + 1) * HD)
                qh = q[:, sl]                                       # (TQ, HD)
                kh = k_sc[:, sl]                                    # (N, HD)
                vh = v_sc[:, sl]                                    # (N, HD)
                # contract the shared head_dim directly -> no k transpose
                s = lax.dot_general(qh, kh, (((1,), (1,)), ((), ())),
                                    preferred_element_type=jnp.float32)  # (TQ, N)
                s = s - jnp.max(s, axis=-1, keepdims=True)
                p = jnp.exp(s)
                p = p * pl.reciprocal(jnp.sum(p, axis=-1, keepdims=True),
                                      approx=True)
                ctx_sc[:, sl] = jnp.dot(p.astype(cd), vh,
                                        preferred_element_type=jnp.float32)

            # ---- Output LoRA projection (both Linears carry a bias). ----
            ctx = ctx_sc[...].astype(cd)                            # (TQ, C)
            h2 = _gelu(jnp.dot(ctx, wpa_ref[...],
                               preferred_element_type=jnp.float32)
                       + bpa_ref[...])
            h2 = h2.astype(cd)
            y = jnp.dot(h2, wpb_ref[...],
                        preferred_element_type=jnp.float32) + bpb_ref[...]
            o_ref[0] = y.astype(o_ref.dtype)

        # Pre-transpose all weights to (in, out) layout; split Wb_qkv into its
        # q / k / v parts; fold the softmax scale into the q weight.
        waT = wa_qkv.T.astype(cd)                           # (C, R)
        wbqT = (wb_qkv[:C].T * scale).astype(cd)            # (R, C)
        wbkT = wb_qkv[C:2 * C].T.astype(cd)                 # (R, C)
        wbvT = wb_qkv[2 * C:].T.astype(cd)                  # (R, C)
        wpaT = wa_p.T.astype(cd)                            # (C, R)
        wpbT = wb_p.T.astype(cd)                            # (R, C)
        bpa2 = ba_p.reshape(1, R).astype(jnp.float32)
        bpb2 = bb_p.reshape(1, C).astype(jnp.float32)
        xc = x.astype(cd)

        # Rough VMEM footprint: double-buffered x / out / weight blocks +
        # h/K/V/context scratch.  Cap below v7x physical (64 MiB).
        csz = jnp.dtype(cd).itemsize
        est = (2 * N * C * csz                               # x full block
               + 2 * TQ * C * x.dtype.itemsize               # out block
               + 2 * (2 * C * R + 4 * R * C) * csz           # weights (buffered)
               + N * R * csz                                 # h scratch
               + 2 * N * C * csz                             # K / V scratch
               + TQ * C * 4                                  # ctx scratch
               + 4 * (R + C) * 4)                            # biases
        vmem_limit = int(min(48 * 1024 * 1024, max(16 * 1024 * 1024, 2 * est)))

        const = lambda b, t: (0, 0)
        return pl.pallas_call(
            kernel,
            out_shape=jax.ShapeDtypeStruct((B, N, C), x.dtype),
            grid_spec=pltpu.PrefetchScalarGridSpec(
                num_scalar_prefetch=0,
                grid=(B, n_qt),
                in_specs=[
                    pl.BlockSpec((1, N, C), lambda b, t: (b, 0, 0)),  # x (full, per batch)
                    pl.BlockSpec((C, R), const),                      # Wa_qkv^T
                    pl.BlockSpec((R, C), const),                      # Wb_q^T (scaled)
                    pl.BlockSpec((R, C), const),                      # Wb_k^T
                    pl.BlockSpec((R, C), const),                      # Wb_v^T
                    pl.BlockSpec((C, R), const),                      # Wa_proj^T
                    pl.BlockSpec((1, R), const),                      # b_a_proj
                    pl.BlockSpec((R, C), const),                      # Wb_proj^T
                    pl.BlockSpec((1, C), const),                      # b_b_proj
                ],
                out_specs=pl.BlockSpec((1, TQ, C), lambda b, t: (b, t, 0)),
                scratch_shapes=[
                    pltpu.VMEM((N, R), cd),            # shared LoRA-A hidden h
                    pltpu.VMEM((N, C), cd),            # K (all heads, this batch)
                    pltpu.VMEM((N, C), cd),            # V
                    pltpu.VMEM((TQ, C), jnp.float32),  # attn @ V context
                ],
            ),
            compiler_params=pltpu.CompilerParams(
                dimension_semantics=("parallel", "arbitrary"),
                vmem_limit_bytes=vmem_limit,
            ),
        )(xc, waT, wbqT, wbkT, wbvT, wpaT, bpa2, wpbT, bpb2)

    return forward


def reference(x, wa_qkv, wb_qkv, wa_p, ba_p, wb_p, bb_p, num_heads):
    """Pure-JAX replica of the PyTorch forward (tanh GELU)."""
    B, N, C = x.shape
    hd = C // num_heads
    scale = hd ** (-0.5)
    h = _gelu(x @ wa_qkv.T)                                  # (B, N, R)
    qkv = (h @ wb_qkv.T).reshape(B, N, 3, num_heads, hd)
    qkv = qkv.transpose(2, 0, 3, 1, 4)                       # (3, B, H, N, hd)
    q, k, v = qkv[0] * scale, qkv[1], qkv[2]
    attn = jax.nn.softmax(jnp.einsum('bhqd,bhkd->bhqk', q, k), axis=-1)
    ctx = jnp.einsum('bhqk,bhkd->bhqd', attn, v)
    ctx = ctx.transpose(0, 2, 1, 3).reshape(B, N, C)
    h2 = _gelu(ctx @ wa_p.T + ba_p)
    return h2 @ wb_p.T + bb_p


if __name__ == "__main__":
    # Small synthetic shapes consistent with the module.
    B, N, C = 2, 32, 32
    num_heads = 4        # head_dim = 8
    rank = 16            # LoRA rank (module default 64; kept small for demo)

    key = jax.random.PRNGKey(0)
    kx, k1, k2, k3, k4, k5, k6 = jax.random.split(key, 7)
    x = jax.random.normal(kx, (B, N, C), dtype=jnp.float32)

    # torch.nn.Linear weight layout: (out_features, in_features)
    wa_qkv = jax.random.normal(k1, (rank, C), jnp.float32) / jnp.sqrt(1.0 * C)
    wb_qkv = jax.random.normal(k2, (3 * C, rank), jnp.float32) / jnp.sqrt(1.0 * rank)
    wa_p = jax.random.normal(k3, (rank, C), jnp.float32) / jnp.sqrt(1.0 * C)
    ba_p = jax.random.normal(k4, (rank,), jnp.float32) * 0.1
    wb_p = jax.random.normal(k5, (C, rank), jnp.float32) / jnp.sqrt(1.0 * rank)
    bb_p = jax.random.normal(k6, (C,), jnp.float32) * 0.1

    with jax.default_matmul_precision("float32"):
        ref = reference(x, wa_qkv, wb_qkv, wa_p, ba_p, wb_p, bb_p, num_heads)

    # f32 compute path, forced multi-q-tile grid (exercises the tiled path);
    # approx reciprocal in softmax -> tolerance 1e-2.
    fwd32 = make_lora_attention(C, num_heads, rank, compute_dtype=jnp.float32,
                                max_q_tile=16)
    out32 = jax.block_until_ready(fwd32(x, wa_qkv, wb_qkv, wa_p, ba_p, wb_p, bb_p))
    assert out32.shape == (B, N, C)
    assert jnp.allclose(out32, ref, atol=1e-2, rtol=1e-2), "f32 kernel mismatch"

    # bf16 compute path (MXU-friendly) — looser tolerance.
    fwd16 = make_lora_attention(C, num_heads, rank, compute_dtype=jnp.bfloat16,
                                max_q_tile=16)
    out16 = jax.block_until_ready(fwd16(x, wa_qkv, wb_qkv, wa_p, ba_p, wb_p, bb_p))
    assert out16.shape == (B, N, C)
    assert jnp.allclose(out16.astype(jnp.float32), ref,
                        atol=1e-1, rtol=1e-1), "bf16 kernel mismatch"

    print("KERNEL_OK")
</pallas_src>

<mosaic_0001>
module attributes {stable_mosaic.version = 11 : i64} {
  func.func @kernel(%arg0: i32, %arg1: i32, %arg2: memref<1x32x32xf32, #tpu.memory_space<vmem>>, %arg3: memref<32x16xf32, #tpu.memory_space<vmem>>, %arg4: memref<16x32xf32, #tpu.memory_space<vmem>>, %arg5: memref<16x32xf32, #tpu.memory_space<vmem>>, %arg6: memref<16x32xf32, #tpu.memory_space<vmem>>, %arg7: memref<32x16xf32, #tpu.memory_space<vmem>>, %arg8: memref<1x16xf32, #tpu.memory_space<vmem>>, %arg9: memref<16x32xf32, #tpu.memory_space<vmem>>, %arg10: memref<1x32xf32, #tpu.memory_space<vmem>>, %arg11: memref<1x16x32xf32, #tpu.memory_space<vmem>>, %arg12: memref<32x16xf32, #tpu.memory_space<vmem>>, %arg13: memref<32x32xf32, #tpu.memory_space<vmem>>, %arg14: memref<32x32xf32, #tpu.memory_space<vmem>>, %arg15: memref<16x32xf32, #tpu.memory_space<vmem>>) attributes {dimension_semantics = [#tpu.dimension_semantics<parallel>, #tpu.dimension_semantics<arbitrary>], iteration_bounds = array<i64: 2, 2>, scalar_prefetch = 0 : i64, scratch_operands = 4 : i64, tpu.core_type = #tpu.core_type<tc>, window_params = [{transform_indices = @transform_0, window_bounds = array<i64: 1, 32, 32>}, {pipeline_mode = #tpu.pipeline_mode<synchronous>, transform_indices = @transform_1, window_bounds = array<i64: 32, 16>}, {pipeline_mode = #tpu.pipeline_mode<synchronous>, transform_indices = @transform_2, window_bounds = array<i64: 16, 32>}, {pipeline_mode = #tpu.pipeline_mode<synchronous>, transform_indices = @transform_3, window_bounds = array<i64: 16, 32>}, {pipeline_mode = #tpu.pipeline_mode<synchronous>, transform_indices = @transform_4, window_bounds = array<i64: 16, 32>}, {pipeline_mode = #tpu.pipeline_mode<synchronous>, transform_indices = @transform_5, window_bounds = array<i64: 32, 16>}, {pipeline_mode = #tpu.pipeline_mode<synchronous>, transform_indices = @transform_6, window_bounds = array<i64: 1, 16>}, {pipeline_mode = #tpu.pipeline_mode<synchronous>, transform_indices = @transform_7, window_bounds = array<i64: 16, 32>}, {pipeline_mode = #tpu.pipeline_mode<synchronous>, transform_indices = @transform_8, window_bounds = array<i64: 1, 32>}, {transform_indices = @transform_9, window_bounds = array<i64: 1, 16, 32>}]} {
    %c0_i32 = arith.constant 0 : i32
    %0 = arith.cmpi eq, %arg1, %c0_i32 : i32
    %1 = arith.extui %0 : i1 to i32
    %c0_i32_0 = arith.constant 0 : i32
    %2 = arith.cmpi ne, %1, %c0_i32_0 : i32
    scf.if %2 {
      %c0_59 = arith.constant 0 : index
      %c0_60 = arith.constant 0 : index
      %c0_61 = arith.constant 0 : index
      %100 = vector.load %arg2[%c0_59, %c0_60, %c0_61] : memref<1x32x32xf32, #tpu.memory_space<vmem>>, vector<1x32x32xf32>
      %101 = vector.shape_cast %100 : vector<1x32x32xf32> to vector<32x32xf32>
      %c0_62 = arith.constant 0 : index
      %c0_63 = arith.constant 0 : index
      %102 = vector.load %arg3[%c0_62, %c0_63] : memref<32x16xf32, #tpu.memory_space<vmem>>, vector<32x16xf32>
      %cst_64 = arith.constant dense<0.000000e+00> : vector<32x16xf32>
      %103 = tpu.matmul %101, %102, %cst_64 {dimension_numbers = #tpu.dot_dimension_numbers<[1], [0], [0], [1], [0, 0, 1, 1], [], []>} : vector<32x32xf32>, vector<32x16xf32>, vector<32x16xf32> -> vector<32x16xf32>
      %104 = arith.mulf %103, %103 : vector<32x16xf32>
      %105 = arith.mulf %103, %104 : vector<32x16xf32>
      %cst_65 = arith.constant 4.471500e-02 : f32
      %106 = vector.broadcast %cst_65 : f32 to vector<32x16xf32>
      %107 = arith.mulf %106, %105 : vector<32x16xf32>
      %108 = arith.addf %103, %107 : vector<32x16xf32>
      %cst_66 = arith.constant 0.797884583 : f32
      %109 = vector.broadcast %cst_66 : f32 to vector<32x16xf32>
      %110 = arith.mulf %109, %108 : vector<32x16xf32>
      %111 = math.tanh %110 : vector<32x16xf32>
      %cst_67 = arith.constant 1.000000e+00 : f32
      %112 = vector.broadcast %cst_67 : f32 to vector<32x16xf32>
      %113 = arith.addf %112, %111 : vector<32x16xf32>
      %cst_68 = arith.constant 5.000000e-01 : f32
      %114 = vector.broadcast %cst_68 : f32 to vector<32x16xf32>
      %115 = arith.mulf %114, %113 : vector<32x16xf32>
      %116 = arith.mulf %103, %115 : vector<32x16xf32>
      %c0_69 = arith.constant 0 : index
      %c0_70 = arith.constant 0 : index
      %117 = vector.load %arg12[%c0_69, %c0_70] : memref<32x16xf32, #tpu.memory_space<vmem>>, vector<32x16xf32>
      tpu.vector_store %arg12[%c0_69, %c0_70], %116 {strides = array<i32>} : memref<32x16xf32, #tpu.memory_space<vmem>>, vector<32x16xf32>,
      %c0_71 = arith.constant 0 : index
      %c0_72 = arith.constant 0 : index
      %118 = vector.load %arg5[%c0_71, %c0_72] : memref<16x32xf32, #tpu.memory_space<vmem>>, vector<16x32xf32>
      %cst_73 = arith.constant dense<0.000000e+00> : vector<32x32xf32>
      %119 = tpu.matmul %116, %118, %cst_73 {dimension_numbers = #tpu.dot_dimension_numbers<[1], [0], [0], [1], [0, 0, 1, 1], [], []>} : vector<32x16xf32>, vector<16x32xf32>, vector<32x32xf32> -> vector<32x32xf32>
      %c0_74 = arith.constant 0 : index
      %c0_75 = arith.constant 0 : index
      %120 = vector.load %arg13[%c0_74, %c0_75] : memref<32x32xf32, #tpu.memory_space<vmem>>, vector<32x32xf32>
      tpu.vector_store %arg13[%c0_74, %c0_75], %119 {strides = array<i32>} : memref<32x32xf32, #tpu.memory_space<vmem>>, vector<32x32xf32>,
      %c0_76 = arith.constant 0 : index
      %c0_77 = arith.constant 0 : index
      %121 = vector.load %arg6[%c0_76, %c0_77] : memref<16x32xf32, #tpu.memory_space<vmem>>, vector<16x32xf32>
      %cst_78 = arith.constant dense<0.000000e+00> : vector<32x32xf32>
      %122 = tpu.matmul %116, %121, %cst_78 {dimension_numbers = #tpu.dot_dimension_numbers<[1], [0], [0], [1], [0, 0, 1, 1], [], []>} : vector<32x16xf32>, vector<16x32xf32>, vector<32x32xf32> -> vector<32x32xf32>
      %c0_79 = arith.constant 0 : index
      %c0_80 = arith.constant 0 : index
      %123 = vector.load %arg14[%c0_79, %c0_80] : memref<32x32xf32, #tpu.memory_space<vmem>>, vector<32x32xf32>
      tpu.vector_store %arg14[%c0_79, %c0_80], %122 {strides = array<i32>} : memref<32x32xf32, #tpu.memory_space<vmem>>, vector<32x32xf32>,
    } else {
    }
    %c16_i32 = arith.constant 16 : i32
    %3 = arith.muli %arg1, %c16_i32 : i32
    %4 = tpu.assume_multiple %3, 16 : i32
    %5 = arith.index_cast %4 : i32 to index
    %c0 = arith.constant 0 : index
    %6 = vector.load %arg12[%5, %c0] : memref<32x16xf32, #tpu.memory_space<vmem>>, vector<16x16xf32>
    %c0_1 = arith.constant 0 : index
    %c0_2 = arith.constant 0 : index
    %7 = vector.load %arg4[%c0_1, %c0_2] : memref<16x32xf32, #tpu.memory_space<vmem>>, vector<16x32xf32>
    %cst = arith.constant dense<0.000000e+00> : vector<16x32xf32>
    %8 = tpu.matmul %6, %7, %cst {dimension_numbers = #tpu.dot_dimension_numbers<[1], [0], [0], [1], [0, 0, 1, 1], [], []>} : vector<16x16xf32>, vector<16x32xf32>, vector<16x32xf32> -> vector<16x32xf32>
    %9 = vector.extract_strided_slice %8 {offsets = [0, 0], sizes = [16, 8], strides = [1, 1]} : vector<16x32xf32> to vector<16x8xf32>
    %c0_3 = arith.constant 0 : index
    %c0_4 = arith.constant 0 : index
    %10 = vector.load %arg13[%c0_3, %c0_4] : memref<32x32xf32, #tpu.memory_space<vmem>>, vector<32x8xf32>
    %c0_5 = arith.constant 0 : index
    %c0_6 = arith.constant 0 : index
    %11 = vector.load %arg14[%c0_5, %c0_6] : memref<32x32xf32, #tpu.memory_space<vmem>>, vector<32x8xf32>
    %cst_7 = arith.constant dense<0.000000e+00> : vector<16x32xf32>
    %12 = tpu.matmul %9, %10, %cst_7 {dimension_numbers = #tpu.dot_dimension_numbers<[1], [1], [0], [0], [0, 0, 1, 0], [], []>} : vector<16x8xf32>, vector<32x8xf32>, vector<16x32xf32> -> vector<16x32xf32>
    %cst_8 = arith.constant dense<0xFF800000> : vector<16xf32>
    %13 = vector.multi_reduction <maximumf>, %12, %cst_8 [1] : vector<16x32xf32> to vector<16xf32>
    %14 = vector.shape_cast %13 : vector<16xf32> to vector<16x1xf32>
    %15 = vector.broadcast %14 : vector<16x1xf32> to vector<16x32xf32>
    %16 = arith.subf %12, %15 : vector<16x32xf32>
    %17 = math.exp %16 : vector<16x32xf32>
    %cst_9 = arith.constant dense<0.000000e+00> : vector<16xf32>
    %18 = vector.multi_reduction <add>, %17, %cst_9 [1] : vector<16x32xf32> to vector<16xf32>
    %19 = vector.shape_cast %18 : vector<16xf32> to vector<16x1xf32>
    %20 = tpu.reciprocal %19 {approx = true} : vector<16x1xf32> -> vector<16x1xf32>
    %21 = vector.broadcast %20 : vector<16x1xf32> to vector<16x32xf32>
    %22 = arith.mulf %17, %21 : vector<16x32xf32>
    %cst_10 = arith.constant dense<0.000000e+00> : vector<16x8xf32>
    %23 = tpu.matmul %22, %11, %cst_10 {dimension_numbers = #tpu.dot_dimension_numbers<[1], [0], [0], [1], [0, 0, 1, 1], [], []>} : vector<16x32xf32>, vector<32x8xf32>, vector<16x8xf32> -> vector<16x8xf32>
    %c0_11 = arith.constant 0 : index
    %c0_12 = arith.constant 0 : index
    %24 = vector.load %arg15[%c0_11, %c0_12] : memref<16x32xf32, #tpu.memory_space<vmem>>, vector<16x8xf32>
    tpu.vector_store %arg15[%c0_11, %c0_12], %23 {strides = array<i32>} : memref<16x32xf32, #tpu.memory_space<vmem>>, vector<16x8xf32>,
    %25 = vector.extract_strided_slice %8 {offsets = [0, 8], sizes = [16, 8], strides = [1, 1]} : vector<16x32xf32> to vector<16x8xf32>
    %c0_13 = arith.constant 0 : index
    %c8 = arith.constant 8 : index
    %26 = vector.load %arg13[%c0_13, %c8] : memref<32x32xf32, #tpu.memory_space<vmem>>, vector<32x8xf32>
    %c0_14 = arith.constant 0 : index
    %c8_15 = arith.constant 8 : index
    %27 = vector.load %arg14[%c0_14, %c8_15] : memref<32x32xf32, #tpu.memory_space<vmem>>, vector<32x8xf32>
    %cst_16 = arith.constant dense<0.000000e+00> : vector<16x32xf32>
    %28 = tpu.matmul %25, %26, %cst_16 {dimension_numbers = #tpu.dot_dimension_numbers<[1], [1], [0], [0], [0, 0, 1, 0], [], []>} : vector<16x8xf32>, vector<32x8xf32>, vector<16x32xf32> -> vector<16x32xf32>
    %cst_17 = arith.constant dense<0xFF800000> : vector<16xf32>
    %29 = vector.multi_reduction <maximumf>, %28, %cst_17 [1] : vector<16x32xf32> to vector<16xf32>
    %30 = vector.shape_cast %29 : vector<16xf32> to vector<16x1xf32>
    %31 = vector.broadcast %30 : vector<16x1xf32> to vector<16x32xf32>
    %32 = arith.subf %28, %31 : vector<16x32xf32>
    %33 = math.exp %32 : vector<16x32xf32>
    %cst_18 = arith.constant dense<0.000000e+00> : vector<16xf32>
    %34 = vector.multi_reduction <add>, %33, %cst_18 [1] : vector<16x32xf32> to vector<16xf32>
    %35 = vector.shape_cast %34 : vector<16xf32> to vector<16x1xf32>
    %36 = tpu.reciprocal %35 {approx = true} : vector<16x1xf32> -> vector<16x1xf32>
    %37 = vector.broadcast %36 : vector<16x1xf32> to vector<16x32xf32>
    %38 = arith.mulf %33, %37 : vector<16x32xf32>
    %cst_19 = arith.constant dense<0.000000e+00> : vector<16x8xf32>
    %39 = tpu.matmul %38, %27, %cst_19 {dimension_numbers = #tpu.dot_dimension_numbers<[1], [0], [0], [1], [0, 0, 1, 1], [], []>} : vector<16x32xf32>, vector<32x8xf32>, vector<16x8xf32> -> vector<16x8xf32>
    %c0_20 = arith.constant 0 : index
    %c8_21 = arith.constant 8 : index
    %40 = vector.load %arg15[%c0_20, %c8_21] : memref<16x32xf32, #tpu.memory_space<vmem>>, vector<16x8xf32>
    tpu.vector_store %arg15[%c0_20, %c8_21], %39 {strides = array<i32>} : memref<16x32xf32, #tpu.memory_space<vmem>>, vector<16x8xf32>,
    %41 = vector.extract_strided_slice %8 {offsets = [0, 16], sizes = [16, 8], strides = [1, 1]} : vector<16x32xf32> to vector<16x8xf32>
    %c0_22 = arith.constant 0 : index
    %c16 = arith.constant 16 : index
    %42 = vector.load %arg13[%c0_22, %c16] : memref<32x32xf32, #tpu.memory_space<vmem>>, vector<32x8xf32>
    %c0_23 = arith.constant 0 : index
    %c16_24 = arith.constant 16 : index
    %43 = vector.load %arg14[%c0_23, %c16_24] : memref<32x32xf32, #tpu.memory_space<vmem>>, vector<32x8xf32>
    %cst_25 = arith.constant dense<0.000000e+00> : vector<16x32xf32>
    %44 = tpu.matmul %41, %42, %cst_25 {dimension_numbers = #tpu.dot_dimension_numbers<[1], [1], [0], [0], [0, 0, 1, 0], [], []>} : vector<16x8xf32>, vector<32x8xf32>, vector<16x32xf32> -> vector<16x32xf32>
    %cst_26 = arith.constant dense<0xFF800000> : vector<16xf32>
    %45 = vector.multi_reduction <maximumf>, %44, %cst_26 [1] : vector<16x32xf32> to vector<16xf32>
    %46 = vector.shape_cast %45 : vector<16xf32> to vector<16x1xf32>
    %47 = vector.broadcast %46 : vector<16x1xf32> to vector<16x32xf32>
    %48 = arith.subf %44, %47 : vector<16x32xf32>
    %49 = math.exp %48 : vector<16x32xf32>
    %cst_27 = arith.constant dense<0.000000e+00> : vector<16xf32>
    %50 = vector.multi_reduction <add>, %49, %cst_27 [1] : vector<16x32xf32> to vector<16xf32>
    %51 = vector.shape_cast %50 : vector<16xf32> to vector<16x1xf32>
    %52 = tpu.reciprocal %51 {approx = true} : vector<16x1xf32> -> vector<16x1xf32>
    %53 = vector.broadcast %52 : vector<16x1xf32> to vector<16x32xf32>
    %54 = arith.mulf %49, %53 : vector<16x32xf32>
    %cst_28 = arith.constant dense<0.000000e+00> : vector<16x8xf32>
    %55 = tpu.matmul %54, %43, %cst_28 {dimension_numbers = #tpu.dot_dimension_numbers<[1], [0], [0], [1], [0, 0, 1, 1], [], []>} : vector<16x32xf32>, vector<32x8xf32>, vector<16x8xf32> -> vector<16x8xf32>
    %c0_29 = arith.constant 0 : index
    %c16_30 = arith.constant 16 : index
    %56 = vector.load %arg15[%c0_29, %c16_30] : memref<16x32xf32, #tpu.memory_space<vmem>>, vector<16x8xf32>
    tpu.vector_store %arg15[%c0_29, %c16_30], %55 {strides = array<i32>} : memref<16x32xf32, #tpu.memory_space<vmem>>, vector<16x8xf32>,
    %57 = vector.extract_strided_slice %8 {offsets = [0, 24], sizes = [16, 8], strides = [1, 1]} : vector<16x32xf32> to vector<16x8xf32>
    %c0_31 = arith.constant 0 : index
    %c24 = arith.constant 24 : index
    %58 = vector.load %arg13[%c0_31, %c24] : memref<32x32xf32, #tpu.memory_space<vmem>>, vector<32x8xf32>
    %c0_32 = arith.constant 0 : index
    %c24_33 = arith.constant 24 : index
    %59 = vector.load %arg14[%c0_32, %c24_33] : memref<32x32xf32, #tpu.memory_space<vmem>>, vector<32x8xf32>
    %cst_34 = arith.constant dense<0.000000e+00> : vector<16x32xf32>
    %60 = tpu.matmul %57, %58, %cst_34 {dimension_numbers = #tpu.dot_dimension_numbers<[1], [1], [0], [0], [0, 0, 1, 0], [], []>} : vector<16x8xf32>, vector<32x8xf32>, vector<16x32xf32> -> vector<16x32xf32>
    %cst_35 = arith.constant dense<0xFF800000> : vector<16xf32>
    %61 = vector.multi_reduction <maximumf>, %60, %cst_35 [1] : vector<16x32xf32> to vector<16xf32>
    %62 = vector.shape_cast %61 : vector<16xf32> to vector<16x1xf32>
    %63 = vector.broadcast %62 : vector<16x1xf32> to vector<16x32xf32>
    %64 = arith.subf %60, %63 : vector<16x32xf32>
    %65 = math.exp %64 : vector<16x32xf32>
    %cst_36 = arith.constant dense<0.000000e+00> : vector<16xf32>
    %66 = vector.multi_reduction <add>, %65, %cst_36 [1] : vector<16x32xf32> to vector<16xf32>
    %67 = vector.shape_cast %66 : vector<16xf32> to vector<16x1xf32>
    %68 = tpu.reciprocal %67 {approx = true} : vector<16x1xf32> -> vector<16x1xf32>
    %69 = vector.broadcast %68 : vector<16x1xf32> to vector<16x32xf32>
    %70 = arith.mulf %65, %69 : vector<16x32xf32>
    %cst_37 = arith.constant dense<0.000000e+00> : vector<16x8xf32>
    %71 = tpu.matmul %70, %59, %cst_37 {dimension_numbers = #tpu.dot_dimension_numbers<[1], [0], [0], [1], [0, 0, 1, 1], [], []>} : vector<16x32xf32>, vector<32x8xf32>, vector<16x8xf32> -> vector<16x8xf32>
    %c0_38 = arith.constant 0 : index
    %c24_39 = arith.constant 24 : index
    %72 = vector.load %arg15[%c0_38, %c24_39] : memref<16x32xf32, #tpu.memory_space<vmem>>, vector<16x8xf32>
    tpu.vector_store %arg15[%c0_38, %c24_39], %71 {strides = array<i32>} : memref<16x32xf32, #tpu.memory_space<vmem>>, vector<16x8xf32>,
    %c0_40 = arith.constant 0 : index
    %c0_41 = arith.constant 0 : index
    %73 = vector.load %arg15[%c0_40, %c0_41] : memref<16x32xf32, #tpu.memory_space<vmem>>, vector<16x32xf32>
    %c0_42 = arith.constant 0 : index
    %c0_43 = arith.constant 0 : index
    %74 = vector.load %arg7[%c0_42, %c0_43] : memref<32x16xf32, #tpu.memory_space<vmem>>, vector<32x16xf32>
    %cst_44 = arith.constant dense<0.000000e+00> : vector<16x16xf32>
    %75 = tpu.matmul %73, %74, %cst_44 {dimension_numbers = #tpu.dot_dimension_numbers<[1], [0], [0], [1], [0, 0, 1, 1], [], []>} : vector<16x32xf32>, vector<32x16xf32>, vector<16x16xf32> -> vector<16x16xf32>
    %c0_45 = arith.constant 0 : index
    %c0_46 = arith.constant 0 : index
    %76 = vector.load %arg8[%c0_45, %c0_46] : memref<1x16xf32, #tpu.memory_space<vmem>>, vector<1x16xf32>
    %77 = vector.broadcast %76 : vector<1x16xf32> to vector<16x16xf32>
    %78 = arith.addf %75, %77 : vector<16x16xf32>
    %79 = arith.mulf %78, %78 : vector<16x16xf32>
    %80 = arith.mulf %78, %79 : vector<16x16xf32>
    %cst_47 = arith.constant 4.471500e-02 : f32
    %81 = vector.broadcast %cst_47 : f32 to vector<16x16xf32>
    %82 = arith.mulf %81, %80 : vector<16x16xf32>
    %83 = arith.addf %78, %82 : vector<16x16xf32>
    %cst_48 = arith.constant 0.797884583 : f32
    %84 = vector.broadcast %cst_48 : f32 to vector<16x16xf32>
    %85 = arith.mulf %84, %83 : vector<16x16xf32>
    %86 = math.tanh %85 : vector<16x16xf32>
    %cst_49 = arith.constant 1.000000e+00 : f32
    %87 = vector.broadcast %cst_49 : f32 to vector<16x16xf32>
    %88 = arith.addf %87, %86 : vector<16x16xf32>
    %cst_50 = arith.constant 5.000000e-01 : f32
    %89 = vector.broadcast %cst_50 : f32 to vector<16x16xf32>
    %90 = arith.mulf %89, %88 : vector<16x16xf32>
    %91 = arith.mulf %78, %90 : vector<16x16xf32>
    %c0_51 = arith.constant 0 : index
    %c0_52 = arith.constant 0 : index
    %92 = vector.load %arg9[%c0_51, %c0_52] : memref<16x32xf32, #tpu.memory_space<vmem>>, vector<16x32xf32>
    %cst_53 = arith.constant dense<0.000000e+00> : vector<16x32xf32>
    %93 = tpu.matmul %91, %92, %cst_53 {dimension_numbers = #tpu.dot_dimension_numbers<[1], [0], [0], [1], [0, 0, 1, 1], [], []>} : vector<16x16xf32>, vector<16x32xf32>, vector<16x32xf32> -> vector<16x32xf32>
    %c0_54 = arith.constant 0 : index
    %c0_55 = arith.constant 0 : index
    %94 = vector.load %arg10[%c0_54, %c0_55] : memref<1x32xf32, #tpu.memory_space<vmem>>, vector<1x32xf32>
    %95 = vector.broadcast %94 : vector<1x32xf32> to vector<16x32xf32>
    %96 = arith.addf %93, %95 : vector<16x32xf32>
    %c0_56 = arith.constant 0 : index
    %c0_57 = arith.constant 0 : index
    %c0_58 = arith.constant 0 : index
    %97 = vector.load %arg11[%c0_56, %c0_57, %c0_58] : memref<1x16x32xf32, #tpu.memory_space<vmem>>, vector<1x16x32xf32>
    %98 = vector.shape_cast %97 : vector<1x16x32xf32> to vector<16x32xf32>
    %99 = vector.shape_cast %96 : vector<16x32xf32> to vector<1x16x32xf32>
    tpu.vector_store %arg11[%c0_56, %c0_57, %c0_58], %99 {strides = array<i32>} : memref<1x16x32xf32, #tpu.memory_space<vmem>>, vector<1x16x32xf32>,
    return
  }
  func.func @transform_0(%arg0: i32, %arg1: i32) -> (i32, i32, i32) {
    %c0_i32 = arith.constant 0 : i32
    %c0_i32_0 = arith.constant 0 : i32
    %c0_i32_1 = arith.constant 0 : i32
    return %arg0, %c0_i32, %c0_i32_0 : i32, i32, i32
  }
  func.func @transform_1(%arg0: i32, %arg1: i32) -> (i32, i32) {
    %c0_i32 = arith.constant 0 : i32
    %c0_i32_0 = arith.constant 0 : i32
    %c0_i32_1 = arith.constant 0 : i32
    return %c0_i32, %c0_i32_0 : i32, i32
  }
  func.func @transform_2(%arg0: i32, %arg1: i32) -> (i32, i32) {
    %c0_i32 = arith.constant 0 : i32
    %c0_i32_0 = arith.constant 0 : i32
    %c0_i32_1 = arith.constant 0 : i32
    return %c0_i32, %c0_i32_0 : i32, i32
  }
  func.func @transform_3(%arg0: i32, %arg1: i32) -> (i32, i32) {
    %c0_i32 = arith.constant 0 : i32
    %c0_i32_0 = arith.constant 0 : i32
    %c0_i32_1 = arith.constant 0 : i32
    return %c0_i32, %c0_i32_0 : i32, i32
  }
  func.func @transform_4(%arg0: i32, %arg1: i32) -> (i32, i32) {
    %c0_i32 = arith.constant 0 : i32
    %c0_i32_0 = arith.constant 0 : i32
    %c0_i32_1 = arith.constant 0 : i32
    return %c0_i32, %c0_i32_0 : i32, i32
  }
  func.func @transform_5(%arg0: i32, %arg1: i32) -> (i32, i32) {
    %c0_i32 = arith.constant 0 : i32
    %c0_i32_0 = arith.constant 0 : i32
    %c0_i32_1 = arith.constant 0 : i32
    return %c0_i32, %c0_i32_0 : i32, i32
  }
  func.func @transform_6(%arg0: i32, %arg1: i32) -> (i32, i32) {
    %c0_i32 = arith.constant 0 : i32
    %c0_i32_0 = arith.constant 0 : i32
    %c0_i32_1 = arith.constant 0 : i32
    return %c0_i32, %c0_i32_0 : i32, i32
  }
  func.func @transform_7(%arg0: i32, %arg1: i32) -> (i32, i32) {
    %c0_i32 = arith.constant 0 : i32
    %c0_i32_0 = arith.constant 0 : i32
    %c0_i32_1 = arith.constant 0 : i32
    return %c0_i32, %c0_i32_0 : i32, i32
  }
  func.func @transform_8(%arg0: i32, %arg1: i32) -> (i32, i32) {
    %c0_i32 = arith.constant 0 : i32
    %c0_i32_0 = arith.constant 0 : i32
    %c0_i32_1 = arith.constant 0 : i32
    return %c0_i32, %c0_i32_0 : i32, i32
  }
  func.func @transform_9(%arg0: i32, %arg1: i32) -> (i32, i32, i32) {
    %c0_i32 = arith.constant 0 : i32
    %c0_i32_0 = arith.constant 0 : i32
    return %arg0, %arg1, %c0_i32 : i32, i32, i32
  }
}

</mosaic_0001>

<bundles_post_ra>
// kernel: tpu_custom_call.1
= control target key start
LH: loop header
LB: loop body
LE: loop exit
PB: predicated region body
PF: predicated region fallthrough
CT: control target
= control target key end

     0   :  { %14 = vsyncpa [#allocation7], 0  ;;  %s3333_s0 = inlined_call_operand.vmem [shape: f32[2,32,32], index: 0, kind: input, shape index: {}]   ;;  %s3334_s1 = inlined_call_operand.vmem [shape: f32[32,16], index: 1, kind: input, shape index: {}]   ;;  %s3335_s2 = inlined_call_operand.vmem [shape: f32[16,32], index: 2, kind: input, shape index: {}]   ;;  %s3336_s3 = inlined_call_operand.hbm [shape: f32[16,32], index: 3, kind: input, shape index: {}]   ;;  %s3337_s4 = inlined_call_operand.hbm [shape: f32[16,32], index: 4, kind: input, shape index: {}]   ;;  %s3338_s5 = inlined_call_operand.vmem [shape: f32[32,16], index: 5, kind: input, shape index: {}]   ;;  %s3339_s6 = inlined_call_operand.vmem [shape: f32[1,16], index: 6, kind: input, shape index: {}]   ;;  %s3340_s7 = inlined_call_operand.vmem [shape: f32[16,32], index: 7, kind: input, shape index: {}]   ;;  %s3341_s8 = inlined_call_operand.vmem [shape: f32[1,32], index: 8, kind: input, shape index: {}]   ;;  %s3342_s9 = inlined_call_operand.hbm [shape: f32[2,32,32], index: 9, kind: output, shape index: {}]  }
   0x1   :  { %15 = vsyncpa [#allocation10], 0 }
   0x2   :  { %16 = vsyncpa [#allocation8], 0 }
   0x3   :  { %18 = vsyncpa [#allocation8 + $0x1], 0  ;;  %s2901_s30 = smov 0   ;;  %s2903_s10 = smov 0  }
   0x4   :  { %s2905_s11 = smov 0   ;;  %s2907_s12 = smov 0  }
   0x5   :  { %s2909_s13 = smov 0   ;;  %s2911_s14 = smov 0  }
   0x6   :  { %s2913_s15 = smov 0   ;;  %s2915_s16 = smov 0  }
   0x7 LB: > { %3356 = sst [smem:[#allocation15_spill]] %s2809_s30  ;;  %s2060_s17 = sadd.s32 4294967295, %s2837_s16   ;;  %s2837_s16 = sphi %s2915_s16, %s24_s16   ;;  %s2833_s15 = sphi %s2913_s15, %s3384_s15   ;;  %s2829_s14 = sphi %s2911_s14, %s3383_s14   ;;  %s2825_s13 = sphi %s2909_s13, %s3382_s13   ;;  %s2821_s12 = sphi %s2907_s12, %s3381_s12   ;;  %s2817_s11 = sphi %s2905_s11, %s3380_s11   ;;  %s2813_s10 = sphi %s2903_s10, %s3386_s10   ;;  %s2809_s30 = sphi %s2901_s30, %s3385_s30  }
   0x8   : > { %3357 = sst [smem:[#allocation16_spill]] %s2817_s11  ;;  %s2061_s18 = sadd.s32 4294967294, %s2837_s16  }
   0x9   : > { %3358 = sst [smem:[#allocation17_spill]] %s2829_s14  ;;  %s33_s19 = sadd.s32 1, %s2829_s14 }
   0xa   : > { %3359 = sst [smem:[#allocation18_spill]] %s2833_s15  ;;  %s36_s20 = sadd.s32 1, %s2833_s15 }
   0xb   : > { %3360 = sst [smem:[#allocation19_spill]] %s2837_s16  ;;  %p34_p0 = scmp.ge.s32.totalorder %s33_s19, 2 }
   0xc   : > { %s239_s21 = sadd.s32 1, %s2817_s11  ;;  %p249_p1 = scmp.ne.s32.totalorder %s2817_s11, %s2813_s10 }
   0xd   : > { %p250_p2 = scmp.eq.s32.totalorder %s2060_s17, 3  ;;  %s3388_s19 = smov (%p34_p0, %s33_s19), 0 }
   0xe   : > { %3361 = sst [smem:[#allocation20_spill]] %s3388_s19  ;;  %s3390_s20 = smov (!%p34_p0, %s36_s20), %s2833_s15 }
   0xf   : > { %s235_s22 = ssub.s32 %s2829_s14, %s3388_s19  ;;  %p2953_p3 = por %p250_p2, %p249_p1 }
  0x10   : > { %p38_p4 = scmp.ge.s32.totalorder %s3390_s20, 2  ;;  %p255_p5 = scmp.ne.s32.totalorder %s2813_s10, %s2809_s30 }
  0x11   : > { %s3362_s23 = scalar_select %p2953_p3, 1, 0 }
  0x12   : > { %p256_p6 = scmp.eq.s32.totalorder %s2061_s18, 3  ;;  %p2062_p7 = scmp.ge.s32.totalorder %s2837_s16, 1 }
  0x13   : > { %s3392_s20 = smov (%p38_p4, %s3390_s20), 0  ;;  %p263_p9 = scmp.lt.s32.totalorder %s2837_s16, 5 }
  0x14   : > { %3363 = sst [smem:[#allocation21_spill]] %s3392_s20  ;;  %p2962_p8 = por %p256_p6, %p255_p5 }
  0x15   : > { %s234_s25 = ssub.s32 %s2833_s15, %s3392_s20  ;;  %p2969_p10 = pnand %p2062_p7, %p263_p9 }
  0x16   : > { %s3364_s24 = scalar_select %p2962_p8, 1, 0 }
  0x17   : > { %s236_s26 = sor.u32 %s235_s22, %s234_s25  ;;  %p2973_p12 = scmp.eq.s32.totalorder %s2060_s17, 0 }
  0x18   : > { %3365 = sst [smem:[#allocation22_spill]] %s3364_s24  ;;  %p237_p11 = scmp.eq.s32.totalorder %s236_s26, 0 }
  0x19   : > { %s3366_s27 = scalar_select %p2969_p10, 1, 0 }
  0x1a   : > { %s3367_s28 = scalar_select %p2973_p12, 1, 0 }
  0x1b   : > { %p2484_p13 = pneg %p2969_p10  ;;  %s2839_s18 = smov [#allocation6]  }
  0x1c   : > { %s2980_s29 = scalar_select %p237_p11, %s2817_s11, %s239_s21  }
  0x1d   : > { %s281_s19 = sshll.u32 %s2839_s18, 4  ;;  %p2984_p0 = pnand %p2973_p12, %p2484_p13  ;;  %s282_s19 = int_to_ptr.vmem [resolvable:$true] %s281_s19 }
  0x1e   : > { %3368 = sst [smem:[#allocation23_spill]] %s2980_s29  ;;  %s2679_s26 = scalar_lea.hbm %s3336_s3, 256 }
  0x1f   : > { %p2680_p1 = scmp.ne.s32.totalorder %s3336_s3, %s2679_s26  ;;  %p2681_p2 = pneg %p2984_p0 }
  0x20   : > { %p2686_p6 = scmp.lt.u32.totalorder %s2679_s26, %s3336_s3 }
  0x21   : > { %p2682_p4 = pnand %p2681_p2, %p2680_p1 }
  0x23   : > { %p2683_p5 = pneg %p2682_p4 }
  0x25   : > { %p2688_p7 = pnand %p2686_p6, %p2683_p5 }
  0x27   : > { %2691 = shalt.err (!%p2688_p7)
}
  0x28   : > { %s2692_s14 = scalar_lea.vmem %s282_s19, 256  ;;  %p2700_p8 = scmp.lt.s32.totalorder %s282_s19, %s282_s19 }
  0x29   : > { %p2693_p9 = scmp.ne.s32.totalorder %s282_s19, %s2692_s14  ;;  %p2701_p3 = scmp.lt.s32.totalorder %s2692_s14, %s2692_s14 }
  0x2b   : > { %p2695_p11 = pnand %p2693_p9, %p2681_p2  ;;  %p2702_p12 = por %p2701_p3, %p2700_p8 }
  0x2d   : > { %p2696_p13 = pneg %p2695_p11 }
  0x2f   : > { %p2703_p10 = pnand %p2702_p12, %p2696_p13 }
  0x31   : > { %2706 = shalt.err (!%p2703_p10)
}
  0x32   : > { %s2840_s15 = smov 128   ;;  %s2841_s20 = smov 8  }
  0x33   : > { %2487 = dma.hbm_to_vmem [thread:$0]  (!%p2984_p0), %s3336_s3, 256, %s282_s19, [#allocation7], %s2840_s15, %s2840_s15, %s2841_s20  }
  0x34   : > { %s2842_s26 = smov [#allocation9]   ;;  %s2707_s11 = scalar_lea.hbm %s3337_s4, 256 }
  0x35   : > { %s294_s21 = sshll.u32 %s2842_s26, 4  ;;  %p2708_p3 = scmp.ne.s32.totalorder %s3337_s4, %s2707_s11  ;;  %s295_s21 = int_to_ptr.vmem [resolvable:$true] %s294_s21 }
  0x36   : > { %p2714_p12 = scmp.lt.u32.totalorder %s2707_s11, %s3337_s4 }
  0x37   : > { %p2710_p8 = pnand %p2708_p3, %p2681_p2 }
  0x39   : > { %p2711_p10 = pneg %p2710_p8 }
  0x3b   : > { %p2716_p1 = pnand %p2714_p12, %p2711_p10 }
  0x3d   : > { %2719 = shalt.err (!%p2716_p1)
}
  0x3e   : > { %s2720_s19 = scalar_lea.vmem %s295_s21, 256  ;;  %p2728_p7 = scmp.lt.s32.totalorder %s295_s21, %s295_s21 }
  0x3f   : > { %p2721_p4 = scmp.ne.s32.totalorder %s295_s21, %s2720_s19  ;;  %p2729_p9 = scmp.lt.s32.totalorder %s2720_s19, %s2720_s19 }
  0x41   : > { %p2723_p5 = pnand %p2721_p4, %p2681_p2  ;;  %p2730_p11 = por %p2729_p9, %p2728_p7 }
  0x43   : > { %p2724_p6 = pneg %p2723_p5 }
  0x45   : > { %p2731_p13 = pnand %p2730_p11, %p2724_p6 }
  0x47   : > { %2734 = shalt.err (!%p2731_p13)
}
  0x48   : > { %2490 = dma.hbm_to_vmem [thread:$0]  (!%p2984_p0), %s3337_s4, 256, %s295_s21, [#allocation10], %s2840_s15, %s2840_s15, %s2841_s20  }
  0x49   : > { %p3370_p3 = scmp.ne.s32.totalorder %s3366_s27, 0 }
  0x4a   : > { %p3371_p8 = scmp.ne.s32.totalorder (!%p3370_p3), %s3367_s28, 0 }
  0x4b   : > { %330 = sbr.rel (%p3370_p3) target bundleno = 3790 (0xece), region = 56 }
  0x52   : > { %2796 = dma.done.wait (%p3371_p8), [#allocation7], 256  }
  0x53   : > { %2798 = vsyncadd (%p3371_p8), [#allocation7], 4294967040 }
  0x54   : > { %2800 = dma.done.wait (%p3371_p8), [#allocation10], 256  }
  0x55   : > { %2802 = vsyncadd (%p3371_p8), [#allocation10], 4294967040  ;;  %s367_s30 = sand.u32 1, %s2813_s10   ;;  %p370_p0 = scmp.lt.s32.totalorder %s2825_s13, 1 }
  0x56   : > { %s2069_s11 = sshll.u32 %s367_s30, 4  ;;  %p2072_p2 = scmp.ne.s32.totalorder %s2821_s12, 0 }
  0x57   : > { %s371_s16 = scalar_select %p370_p0, %s2825_s13, 1 }
  0x58   : > { %s3048_s25 = scalar_lea.vmem [#allocation11], %s2069_s11  ;;  %379 = sbr.rel (%p2072_p2) target bundleno = 566 (0x236), region = 68  ;;  %v384_v0 = vld [vmem:[%s3334_s1] sm:$0xff] (!%p2072_p2)  ;;  %v385_v1 = vld [vmem:[%s3334_s1 + $0x8] sm:$0xff] (!%p2072_p2)  ;;  %v386_v2 = vld [vmem:[%s3334_s1 + $0x10] sm:$0xff] (!%p2072_p2)  ;;  %vm388_vm0 = vcmask (!%p2072_p2), 261120  }
  0x59   : > { %s2132_s27 = sshll.u32 %s371_s16, 5  ;;  %v2362_v3 = vpack.c.bf16 (!%p2072_p2), %v385_v1, %v384_v0  ;;  %v387_v4 = vld [vmem:[%s3334_s1 + $0x18] sm:$0xff] (!%p2072_p2)  ;;  %v527_v10 = vld [vmem:[#allocation6] sm:$0xff] (!%p2072_p2)  ;;  %v630_v13 = vld [vmem:[#allocation9] sm:$0xff] (!%p2072_p2)  ;;  %vm522_vm1 = vcmask (!%p2072_p2), 130048  }
  0x5a   : > { %s374_s20 = scalar_lea.vmem %s3333_s0, %s2132_s27  ;;  %v2366_v6 = vpack.c.bf16 (!%p2072_p2), %v387_v4, %v386_v2  ;;  %v528_v11 = vld [vmem:[#allocation6 + $0x8] sm:$0xff] (!%p2072_p2)  ;;  %v631_v14 = vld [vmem:[#allocation9 + $0x8] sm:$0xff] (!%p2072_p2) }
  0x5b   : > { %v380_v5 = vld [vmem:[%s374_s20] sm:$0xff] (!%p2072_p2)  ;;  %2363 = vmatprep.subr.bf16.mxu0 (!%p2072_p2), %v2362_v3  ;;  %v381_v7 = vld [vmem:[%s374_s20 + $0x8] sm:$0xff] (!%p2072_p2)  ;;  %v382_v8 = vld [vmem:[%s374_s20 + $0x10] sm:$0xff] (!%p2072_p2)  ;;  %v2370_v12 = vpack.c.bf16 (!%p2072_p2), %v528_v11, %v527_v10  ;;  %v2374_v15 = vpack.c.bf16 (!%p2072_p2), %v631_v14, %v630_v13 }
  0x5c   : > { %2223 = vmatprep.mubr.msk.f32.mxu0 (!%p2072_p2), %vm388_vm0, %v380_v5  ;;  %2365 = vmatpush3.bf16.msra.mxu0 (!%p2072_p2), %v2362_v3  ;;  %v383_v9 = vld [vmem:[%s374_s20 + $0x18] sm:$0xff] (!%p2072_p2) }
  0x5d   : > { %2367 = vmatprep.subr.bf16.mxu0 (!%p2072_p2), %v2366_v6  ;;  %2371 = vmatprep.subr.bf16.mxu1 (!%p2072_p2), %v2370_v12 }
  0x5e   : > { %2373 = vmatpush3.bf16.msra.mxu1 (!%p2072_p2), %v2370_v12 }
  0x5f   : > { %2375 = vmatprep.subr.bf16.mxu1 %v2374_v15 }
  0x60   : > { %2369 = vmatpush3.bf16.msra.mxu0 %v2366_v6 }
  0x63   : > { %2224 = vmatmul.mubr.msk.f32.vlgmr.msra.gmra.mrb[0].mxu0 %vm388_vm0, %v381_v7 }
  0x64   : > { %2226 = vmatprep.mubr.msk.f32.mxu0 %vm388_vm0, %v382_v8 }
  0x67   : > { %2227 = vmatmul.mubr.msk.f32.gmra.mrb[2].mxu0 %vm388_vm0, %v383_v9 }
 0x136   : > { %v2225_v16 = vpop.f32.mrb[0].mxu0 }
 0x137   : > { %v487_v17 = vmul.f32 %v2225_v16, %v2225_v16  ;;  %v467_v18 = vpop.f32.mrb[1].mxu0 }
 0x138   : > { %v486_v19 = vmul.f32 %v467_v18, %v467_v18 }
 0x139   : > { %v491_v20 = vmul.f32 %v2225_v16, %v487_v17 }
 0x13a   : > { %v490_v21 = vmul.f32 %v486_v19, %v467_v18  ;;  %v2228_v22 = vpop.f32.mrb[2].mxu0 }
 0x13b   : > { %v495_v23 = vmul.f32 0.044715, %v491_v20  ;;  %v489_v24 = vmul.f32 %v2228_v22, %v2228_v22  ;;  %v477_v25 = vpop.f32.mrb[3].mxu0 }
 0x13c   : > { %v494_v26 = vmul.f32 0.044715, %v490_v21  ;;  %v488_v27 = vmul.f32 %v477_v25, %v477_v25 }
 0x13d   : > { %v499_v28 = vadd.f32 %v2225_v16, %v495_v23  ;;  %v493_v29 = vmul.f32 %v2228_v22, %v489_v24 }
 0x13e   : > { %v498_v30 = vadd.f32 %v494_v26, %v467_v18  ;;  %v492_v31 = vmul.f32 %v488_v27, %v477_v25 }
 0x13f   : > { %v503_v32 = vmul.f32 0.7978846, %v499_v28  ;;  %v497_v33 = vmul.f32 0.044715, %v493_v29 }
 0x140   : > { %v502_v34 = vmul.f32 0.7978846, %v498_v30  ;;  %v496_v35 = vmul.f32 0.044715, %v492_v31 }
 0x141   : > { %2575 = vtanh.f32 %v503_v32  ;;  %v501_v36 = vadd.f32 %v2228_v22, %v497_v33 }
 0x142   : > { %2577 = vtanh.f32 %v502_v34  ;;  %v500_v37 = vadd.f32 %v496_v35, %v477_v25 }
 0x143   : > { %v505_v38 = vmul.f32 0.7978846, %v501_v36 }
 0x144   : > { %v504_v39 = vmul.f32 0.7978846, %v500_v37 }
 0x145   : > { %2579 = vtanh.f32 %v505_v38 }
 0x146   : > { %2581 = vtanh.f32 %v504_v39 }
 0x14b   : > { %v2576_v40 = vpop.eup %2575 }
 0x14c   : > { %v2578_v41 = vpop.eup %2577  ;;  %v511_v42 = vadd.f32 1.0, %v2576_v40 }
 0x14d   : > { %v510_v43 = vadd.f32 1.0, %v2578_v41 }
 0x14e   : > { %v515_v44 = vmul.f32 0.5, %v511_v42 }
 0x14f   : > { %v2580_v45 = vpop.eup %2579  ;;  %v514_v46 = vmul.f32 0.5, %v510_v43 }
 0x150   : > { %v2582_v47 = vpop.eup %2581  ;;  %v519_v48 = vmul.f32 %v2225_v16, %v515_v44  ;;  %v513_v49 = vadd.f32 1.0, %v2580_v45 }
 0x151   : > { %v512_v50 = vadd.f32 1.0, %v2582_v47  ;;  %v518_v51 = vmul.f32 %v514_v46, %v467_v18 }
 0x152   : > { %524 = vst.msk [vmem:[#allocation2 + $0x8] sm:$0xff] %vm522_vm1, %v519_v48  ;;  %v517_v52 = vmul.f32 0.5, %v513_v49 }
 0x153   : > { %v516_v53 = vmul.f32 0.5, %v512_v50  ;;  %523 = vst.msk [vmem:[#allocation2] sm:$0xff] %vm522_vm1, %v518_v51  ;;  %2233 = vmatprep.mubr.msk.f32.mxu1 %vm522_vm1, %v518_v51 }
 0x154   : > { %v521_v54 = vmul.f32 %v2228_v22, %v517_v52  ;;  %2234 = vmatmul.mubr.msk.f32.vlgmr.msra.gmra.mrb[0].mxu1 %vm522_vm1, %v519_v48 }
 0x155   : > { %v520_v55 = vmul.f32 %v516_v53, %v477_v25  ;;  %2377 = vmatpush3.bf16.msra.mxu1 %v2374_v15 }
 0x156   : > { %526 = vst.msk [vmem:[#allocation2 + $0x18] sm:$0xff] %vm522_vm1, %v521_v54 }
 0x157   : > { %525 = vst.msk [vmem:[#allocation2 + $0x10] sm:$0xff] %vm522_vm1, %v520_v55  ;;  %2236 = vmatprep.mubr.msk.f32.mxu1 %vm522_vm1, %v520_v55 }
 0x158   : > { %2237 = vmatmul.mubr.msk.f32.gmra.mrb[2].mxu1 %vm522_vm1, %v521_v54 }
 0x159   : > { %2243 = vmatprep.mubr.msk.f32.mxu1 %vm522_vm1, %v518_v51 }
 0x15c   : > { %2244 = vmatmul.mubr.msk.f32.vlgmr.msra.gmra.mrb[4].mxu1 %vm522_vm1, %v519_v48 }
 0x15d   : > { %2246 = vmatprep.mubr.msk.f32.mxu1 %vm522_vm1, %v520_v55 }
 0x160   : > { %2247 = vmatmul.mubr.msk.f32.gmra.mrb[6].mxu1 %vm522_vm1, %v521_v54 }
 0x227   : > { %v2235_v56 = vpop.f32.mrb[0].mxu1 }
 0x228   : > { %627 = vst.msk [vmem:[#allocation3 + $0x8] sm:$0xff] %vm388_vm0, %v2235_v56  ;;  %v607_v57 = vpop.f32.mrb[1].mxu1 }
 0x229   : > { %626 = vst.msk [vmem:[#allocation3] sm:$0xff] %vm388_vm0, %v607_v57 }
 0x22b   : > { %v2238_v58 = vpop.f32.mrb[2].mxu1 }
 0x22c   : > { %629 = vst.msk [vmem:[#allocation3 + $0x18] sm:$0xff] %vm388_vm0, %v2238_v58  ;;  %v617_v59 = vpop.f32.mrb[3].mxu1 }
 0x22d   : > { %628 = vst.msk [vmem:[#allocation3 + $0x10] sm:$0xff] %vm388_vm0, %v617_v59 }
 0x22f   : > { %v2245_v60 = vpop.f32.mrb[4].mxu1 }
 0x230   : > { %718 = vst.msk [vmem:[#allocation4 + $0x8] sm:$0xff] %vm388_vm0, %v2245_v60  ;;  %v698_v61 = vpop.f32.mrb[5].mxu1 }
 0x231   : > { %717 = vst.msk [vmem:[#allocation4] sm:$0xff] %vm388_vm0, %v698_v61 }
 0x233   : > { %v2248_v62 = vpop.f32.mrb[6].mxu1 }
 0x234   : > { %720 = vst.msk [vmem:[#allocation4 + $0x18] sm:$0xff] %vm388_vm0, %v2248_v62  ;;  %v708_v63 = vpop.f32.mrb[7].mxu1 }
 0x235   : > { %719 = vst.msk [vmem:[#allocation4 + $0x10] sm:$0xff] %vm388_vm0, %v708_v63 }
 0x236 PF: > { %v725_v0 = vld [vmem:[%s3335_s2] sm:$0xff]  ;;  %v726_v1 = vld [vmem:[%s3335_s2 + $0x8] sm:$0xff]  ;;  %s2085_s22 = sshll.u32 %s2821_s12, 4  ;;  %vm727_vm2 = vcmask 130048   ;;  %vm817_vm3 = vcmask 64512   ;;  %v811_v6 = vld [vmem:[#allocation3 + $0x10] sm:$0xff] }
 0x237   : > { %v809_v2 = vld [vmem:[#allocation3] sm:$0xff]  ;;  %v2378_v3 = vpack.c.bf16 %v726_v1, %v725_v0  ;;  %v810_v4 = vld [vmem:[#allocation3 + $0x8] sm:$0xff]  ;;  %vm3096_vm4 = vmpackc.low %vm817_vm3, %vm817_vm3  ;;  %s722_s15 = scalar_lea.vmem [#allocation2], %s2085_s22  ;;  %vm911_vm5 = vcmask 261120   ;;  %s2843_s20 = smov 120   ;;  %vm1255_vm6 = vcmask 130112  }
 0x238   : > { %v723_v7 = vld [vmem:[%s722_s15] sm:$0xff]  ;;  %v2382_v8 = vpack.c.bf16 %v810_v4, %v809_v2  ;;  %v812_v9 = vld [vmem:[#allocation3 + $0x18] sm:$0xff]  ;;  %v724_v11 = vld [vmem:[%s722_s15 + $0x8] sm:$0xff]  ;;  %v3120_v18 = vpack.i.bf16 %v810_v4, %v809_v2  ;;  %s2844_s28 = smov 112   ;;  %s2845_s17 = smov 104   ;;  %vm1496_vm7 = vcmask 195712  }
 0x239   : > { %2379 = vmatprep.subr.bf16.mxu0 %v2378_v3  ;;  %2253 = vmatprep.mubr.msk.f32.mxu0 %vm727_vm2, %v723_v7  ;;  %v2388_v10 = vpack.c.bf16 %v812_v9, %v811_v6  ;;  %v3126_v29 = vld [vmem:[#allocation4] sm:$0xff]  ;;  %v3128_v30 = vld [vmem:[#allocation4 + $0x8] sm:$0xff]  ;;  %v3132_v32 = vpack.i.bf16 %v812_v9, %v811_v6  ;;  %s2846_s26 = smov 8   ;;  %s2847_s21 = smov 16   ;;  %vm1737_vm8 = vcmask 261312  }
 0x23a   : > { %2381 = vmatpush3.bf16.msra.mxu0 %v2378_v3  ;;  %2384 = vmatprep.subr.msk.bf16.mxu1 %vm3096_vm4, %v2382_v8  ;;  %v2394_v31 = vpack.c.bf16 %v3128_v30, %v3126_v29  ;;  %v3170_v6 = vpack.i.bf16 %v3128_v30, %v3126_v29  ;;  %s2848_s22 = smov 24   ;;  %s2127_s14 = sshll.u32 %s2821_s12, 1 }
 0x23b   : > { %2387 = vmatpush3.bf16.xpose.msk.msra.mxu1 %vm3096_vm4, %v2382_v8  ;;  %v816_v34 = vld [vmem:[#allocation4 + $0x18] sm:$0xff]  ;;  %s2128_s19 = sshll.u32 %s2825_s13, 2  ;;  %s1960_s27 = sshll.u32 %s3048_s25, 4  ;;  %s3272_s27 = int_to_ptr.vmem [resolvable:$true] %s1960_s27 }
 0x23c   : > { %2390 = vmatprep.subr.msk.bf16.mxu1 %vm3096_vm4, %v2388_v10  ;;  %2395 = vmatprep.subr.bf16.mxu0 %v2394_v31  ;;  %v815_v33 = vld [vmem:[#allocation4 + $0x10] sm:$0xff]  ;;  %s1957_s24 = sadd.s32 %s2128_s19, %s2127_s14  ;;  %s3280_s12 = scalar_lea.sflag [#allocation8], %s367_s30 }
 0x23d   : > { %2254 = vmatmul.mubr.msk.f32.vlgmr.msra.gmra.mrb[0].mxu0 %vm727_vm2, %v724_v11  ;;  %v2398_v35 = vpack.c.bf16 %v816_v34, %v815_v33  ;;  %v3156_v58 = vpack.i.bf16 %v816_v34, %v815_v33  ;;  %s2129_s16 = sshll.u32 %s1957_s24, 7  ;;  %s2735_s13 = scalar_lea.vmem %s3272_s27, 256 }
 0x23e   : > { %2397 = vmatpush3.bf16.msra.mxu0 %v2394_v31  ;;  %p2736_p10 = scmp.ne.s32.totalorder %s3272_s27, %s2735_s13  ;;  %p3374_p12 = scmp.ne.s32.totalorder %s3362_s23, 0 }
 0x23f   : > { %2399 = vmatprep.subr.bf16.mxu0 %v2398_v35 }
 0x240   : > { %p2737_p1 = pnand %p2736_p10, %p3374_p12 }
 0x242   : > { %2401 = vmatpush3.bf16.msra.mxu0 %v2398_v35  ;;  %p2738_p4 = pneg %p2737_p1 }
 0x243   : > { %2393 = vmatpush3.bf16.xpose.msk.msra.mxu1 %vm3096_vm4, %v2388_v10 }
 0x310   : > { %v3110_v12 = vpop.f32.mrb[0].mxu0 }
 0x311   : > { %v3112_v13 = vpop.f32.mrb[1].mxu0 }
 0x312   : > { %2264 = vmatprep.mubr.msk.f32.mxu1 %vm817_vm3, %v3112_v13 }
 0x313   : > { %2265 = vmatmul.mubr.msk.f32.vlgmr.msra.gmra.mrb[0].mxu1 %vm817_vm3, %v3110_v12 }
 0x3e6   : > { %v2266_v14 = vpop.f32.mrb[0].mxu1 }
 0x3e7   : > { %v902_v15 = vpop.f32.mrb[1].mxu1  ;;  %v915_v17 = vsel %vm911_vm5, %v2266_v14, -inf }
 0x3e8   : > { %v912_v16 = vsel %vm911_vm5, %v902_v15, -inf }
 0x3e9   : > { %913 = vmax.xlane.f32.xlu0 %v912_v16 }
 0x3ed   : > { %916 = vmax.xlane.f32.xlu0 %v915_v17 }
 0x403   : > { %2584 = vrot.lane.b32.xlu0 %v3120_v18, %s2843_s20 }
 0x476   : > { %v914_v19 = vpop.xlane.xlu0 %913 }
 0x477   : > { %v918_v20 = vsub.f32 %v902_v15, %v914_v19 }
 0x479   : > { %v920_v23 = vmul.f32 1.442695, %v918_v20 }
 0x47a   : > { %v917_v21 = vpop.xlane.xlu0 %916 }
 0x47b   : > { %v919_v22 = vsub.f32 %v2266_v14, %v917_v21 }
 0x47d   : > { %v922_v24 = vmul.f32 1.442695, %v919_v22 }
 0x47e   : > { %v2585_v36 = vpop.permute.xlu0 %2584 }
 0x47f   : > { %2643 = vpow2.f32 %v922_v24  ;;  %v2587_v37 = vunpack.i.h.bf16 %v2585_v36  ;;  %v2586_v38 = vunpack.i.l.bf16 %v2585_v36 }
 0x480   : > { %2645 = vpow2.f32 %v920_v23 }
 0x481   : > { %v2402_v39 = vpack.c.bf16 %v2587_v37, %v2586_v38 }
 0x483   : > { %2404 = vmatprep.subr.msk.bf16.mxu0 %vm3096_vm4, %v2402_v39 }
 0x489   : > { %v2644_v25 = vpop.eup %2643 }
 0x48a   : > { %v927_v26 = vsel %vm911_vm5, %v2644_v25, 0.0  ;;  %v2646_v27 = vpop.eup %2645 }
 0x48b   : > { %928 = vadd.xlane.f32.xlu1 %v927_v26  ;;  %v924_v28 = vsel %vm911_vm5, %v2646_v27, 0.0 }
 0x48f   : > { %925 = vadd.xlane.f32.xlu1 %v924_v28 }
 0x4a0   : > { %2589 = vrot.lane.b32.xlu1 %v3132_v32, %s2843_s20 }
 0x4a4   : > { %1025 = vrot.lane.b32.xlu1 %v3112_v13, %s2843_s20 }
 0x4a8   : > { %1027 = vrot.lane.b32.xlu1 %v3110_v12, %s2843_s20 }
 0x518   : > { %v929_v40 = vpop.xlane.xlu1 %928 }
 0x519   : > { %2647 = vrcp.f32 %v929_v40 }
 0x51c   : > { %v926_v41 = vpop.xlane.xlu1 %925 }
 0x51d   : > { %2649 = vrcp.f32 %v926_v41 }
 0x520   : > { %v2590_v42 = vpop.permute.xlu1 %2589 }
 0x521   : > { %v2592_v43 = vunpack.i.h.bf16 %v2590_v42  ;;  %v2591_v44 = vunpack.i.l.bf16 %v2590_v42 }
 0x523   : > { %v2648_v45 = vpop.eup %2647  ;;  %v2408_v49 = vpack.c.bf16 %v2592_v43, %v2591_v44 }
 0x524   : > { %v933_v48 = vmul.f32 %v2648_v45, %v2644_v25  ;;  %v1026_v50 = vpop.permute.xlu1 %1025 }
 0x527   : > { %v2650_v46 = vpop.eup %2649 }
 0x528   : > { %v932_v47 = vmul.f32 %v2650_v46, %v2646_v27  ;;  %v1028_v51 = vpop.permute.xlu1 %1027 }
 0x52a   : > { %2275 = vmatprep.mubr.msk.f32.mxu0 %vm911_vm5, %v932_v47 }
 0x52b   : > { %2276 = vmatmul.mubr.msk.f32.vlgmr.msra.gmra.mrb[2].mxu0 %vm911_vm5, %v933_v48 }
 0x52c   : > { %2407 = vmatpush3.bf16.xpose.msk.msra.mxu0 %vm3096_vm4, %v2402_v39  ;;  %2286 = vmatprep.mubr.msk.f32.mxu0 %vm817_vm3, %v1026_v50 }
 0x52d   : > { %2410 = vmatprep.subr.msk.bf16.mxu0 %vm3096_vm4, %v2408_v49 }
 0x534   : > { %2413 = vmatpush3.bf16.xpose.msk.msra.mxu0 %vm3096_vm4, %v2408_v49 }
 0x53b   : > { %2287 = vmatmul.mubr.msk.f32.vlgmr.msra.gmra.mrb[4].mxu0 %vm817_vm3, %v1028_v51 }
 0x5fe   : > { %v2277_v52 = vpop.f32.mrb[2].mxu0 }
 0x5ff   : > { %1016 = vst.msk [vmem:[#allocation5 + $0x8] sm:$0xff] %vm817_vm3, %v2277_v52  ;;  %v1006_v53 = vpop.f32.mrb[3].mxu0 }
 0x600   : > { %1015 = vst.msk [vmem:[#allocation5] sm:$0xff] %vm817_vm3, %v1006_v53 }
 0x60e   : > { %v2288_v54 = vpop.f32.mrb[4].mxu0 }
 0x60f   : > { %v1119_v55 = vpop.f32.mrb[5].mxu0  ;;  %v1131_v56 = vsel %vm911_vm5, %v2288_v54, -inf }
 0x610   : > { %1132 = vmax.xlane.f32.xlu1 %v1131_v56  ;;  %v1128_v57 = vsel %vm911_vm5, %v1119_v55, -inf }
 0x611   : > { %1129 = vmax.xlane.f32.xlu0 %v1128_v57 }
 0x621   : > { %2599 = vrot.lane.b32.xlu1 %v3156_v58, %s2843_s20 }
 0x625   : > { %2604 = vrot.lane.b32.xlu1 %v3120_v18, %s2844_s28 }
 0x629   : > { %2609 = vrot.lane.b32.xlu1 %v3132_v32, %s2844_s28 }
 0x62d   : > { %1268 = vrot.lane.b32.xlu1 %v3110_v12, %s2844_s28 }
 0x69d   : > { %v1133_v59 = vpop.xlane.xlu1 %1132 }
 0x69e   : > { %v1135_v60 = vsub.f32 %v2288_v54, %v1133_v59  ;;  %v1130_v61 = vpop.xlane.xlu0 %1129 }
 0x69f   : > { %v1134_v62 = vsub.f32 %v1119_v55, %v1130_v61 }
 0x6a0   : > { %v1138_v63 = vmul.f32 1.442695, %v1135_v60 }
 0x6a1   : > { %v1136_v0 = vmul.f32 1.442695, %v1134_v62  ;;  %v2600_v8 = vpop.permute.xlu1 %2599 }
 0x6a2   : > { %2651 = vpow2.f32 %v1138_v63  ;;  %v2602_v10 = vunpack.i.h.bf16 %v2600_v8  ;;  %v2601_v11 = vunpack.i.l.bf16 %v2600_v8 }
 0x6a3   : > { %2653 = vpow2.f32 %v1136_v0 }
 0x6a4   : > { %v2418_v19 = vpack.c.bf16 %v2602_v10, %v2601_v11 }
 0x6a5   : > { %v2605_v17 = vpop.permute.xlu1 %2604 }
 0x6a6   : > { %v2607_v20 = vunpack.i.h.bf16 %v2605_v17  ;;  %v2606_v21 = vunpack.i.l.bf16 %v2605_v17 }
 0x6a8   : > { %v2422_v24 = vpack.c.bf16 %v2607_v20, %v2606_v21 }
 0x6a9   : > { %v2610_v27 = vpop.permute.xlu1 %2609 }
 0x6aa   : > { %v2612_v29 = vunpack.i.h.bf16 %v2610_v27  ;;  %v2611_v30 = vunpack.i.l.bf16 %v2610_v27 }
 0x6ac   : > { %v2652_v1 = vpop.eup %2651  ;;  %v2428_v33 = vpack.c.bf16 %v2612_v29, %v2611_v30 }
 0x6ad   : > { %v1143_v2 = vsel %vm911_vm5, %v2652_v1, 0.0  ;;  %v2654_v3 = vpop.eup %2653  ;;  %v1269_v34 = vpop.permute.xlu1 %1268 }
 0x6ae   : > { %1144 = vadd.xlane.f32.xlu0 %v1143_v2  ;;  %v1140_v4 = vsel %vm911_vm5, %v2654_v3, 0.0 }
 0x6b2   : > { %1141 = vadd.xlane.f32.xlu0 %v1140_v4 }
 0x6c8   : > { %2594 = vrot.lane.b32.xlu0 %v3170_v6, %s2843_s20  ;;  %s3270_s20 = scalar_lea.hbm %s3342_s9, %s2129_s16 }
 0x6cc   : > { %1266 = vrot.lane.b32.xlu0 %v3112_v13, %s2844_s28 }
 0x73b   : > { %v1145_v7 = vpop.xlane.xlu0 %1144 }
 0x73f   : > { %v1142_v9 = vpop.xlane.xlu0 %1141 }
 0x740   : > { %2655 = vrcp.f32 %v1142_v9 }
 0x741   : > { %2657 = vrcp.f32 %v1145_v7 }
 0x743   : > { %v2595_v14 = vpop.permute.xlu0 %2594 }
 0x744   : > { %v2597_v15 = vunpack.i.h.bf16 %v2595_v14  ;;  %v2596_v16 = vunpack.i.l.bf16 %v2595_v14 }
 0x746   : > { %v2414_v22 = vpack.c.bf16 %v2597_v15, %v2596_v16 }
 0x747   : > { %v1267_v31 = vpop.permute.xlu0 %1266 }
 0x748   : > { %2415 = vmatprep.subr.bf16.mxu1 %v2414_v22 }
 0x749   : > { %2417 = vmatpush3.bf16.msra.mxu1 %v2414_v22 }
 0x74a   : > { %v2656_v23 = vpop.eup %2655  ;;  %2419 = vmatprep.subr.bf16.mxu1 %v2418_v19 }
 0x74b   : > { %v2658_v25 = vpop.eup %2657  ;;  %v1148_v26 = vmul.f32 %v2656_v23, %v2654_v3 }
 0x74c   : > { %v1149_v28 = vmul.f32 %v2658_v25, %v2652_v1 }
 0x74d   : > { %2421 = vmatpush3.bf16.msra.mxu1 %v2418_v19  ;;  %2297 = vmatprep.mubr.msk.f32.mxu1 %vm911_vm5, %v1148_v26 }
 0x74e   : > { %2424 = vmatprep.subr.msk.bf16.mxu1 %vm3096_vm4, %v2422_v24 }
 0x750   : > { %2298 = vmatmul.mubr.msk.f32.vlgmr.msra.gmra.mrb[2].mxu1 %vm911_vm5, %v1149_v28 }
 0x751   : > { %2308 = vmatprep.mubr.msk.f32.mxu1 %vm817_vm3, %v1267_v31 }
 0x756   : > { %2427 = vmatpush3.bf16.xpose.msk.msra.mxu1 %vm3096_vm4, %v2422_v24 }
 0x757   : > { %2430 = vmatprep.subr.msk.bf16.mxu1 %vm3096_vm4, %v2428_v33 }
 0x75e   : > { %2433 = vmatpush3.bf16.xpose.msk.msra.mxu1 %vm3096_vm4, %v2428_v33 }
 0x765   : > { %2309 = vmatmul.mubr.msk.f32.vlgmr.msra.gmra.mrb[4].mxu1 %vm817_vm3, %v1269_v34 }
 0x823   : > { %v3188_v35 = vpop.f32.mrb[2].mxu1 }
 0x824   : > { %v3190_v36 = vpop.f32.mrb[3].mxu1 }
 0x838   : > { %v2310_v37 = vpop.f32.mrb[4].mxu1 }
 0x839   : > { %v1360_v38 = vpop.f32.mrb[5].mxu1  ;;  %v1372_v39 = vsel %vm911_vm5, %v2310_v37, -inf }
 0x83a   : > { %1373 = vmax.xlane.f32.xlu1 %v1372_v39  ;;  %v1369_v40 = vsel %vm911_vm5, %v1360_v38, -inf }
 0x83b   : > { %1370 = vmax.xlane.f32.xlu0 %v1369_v40 }
 0x84b   : > { %2619 = vrot.lane.b32.xlu1 %v3156_v58, %s2844_s28 }
 0x84f   : > { %2624 = vrot.lane.b32.xlu1 %v3120_v18, %s2845_s17 }
 0x853   : > { %2629 = vrot.lane.b32.xlu1 %v3132_v32, %s2845_s17 }
 0x857   : > { %1509 = vrot.lane.b32.xlu1 %v3110_v12, %s2845_s17 }
 0x8c7   : > { %v1374_v41 = vpop.xlane.xlu1 %1373 }
 0x8c8   : > { %v1376_v42 = vsub.f32 %v2310_v37, %v1374_v41  ;;  %v1371_v43 = vpop.xlane.xlu0 %1370 }
 0x8c9   : > { %v1375_v44 = vsub.f32 %v1360_v38, %v1371_v43 }
 0x8ca   : > { %v1379_v45 = vmul.f32 1.442695, %v1376_v42 }
 0x8cb   : > { %v1377_v46 = vmul.f32 1.442695, %v1375_v44  ;;  %v2620_v32 = vpop.permute.xlu1 %2619 }
 0x8cc   : > { %2659 = vpow2.f32 %v1379_v45  ;;  %v2622_v51 = vunpack.i.h.bf16 %v2620_v32  ;;  %v2621_v52 = vunpack.i.l.bf16 %v2620_v32  ;;  %v1742_v45 = vld [vmem:[%s3338_s5] sm:$0xff] }
 0x8cd   : > { %2661 = vpow2.f32 %v1377_v46  ;;  %v1743_v46 = vld [vmem:[%s3338_s5 + $0x8] sm:$0xff] }
 0x8ce   : > { %v2438_v57 = vpack.c.bf16 %v2622_v51, %v2621_v52 }
 0x8cf   : > { %v2625_v56 = vpop.permute.xlu1 %2624 }
 0x8d0   : > { %v2627_v59 = vunpack.i.h.bf16 %v2625_v56  ;;  %v2626_v60 = vunpack.i.l.bf16 %v2625_v56 }
 0x8d2   : > { %v2442_v63 = vpack.c.bf16 %v2627_v59, %v2626_v60 }
 0x8d3   : > { %v2630_v1 = vpop.permute.xlu1 %2629 }
 0x8d4   : > { %v2632_v3 = vunpack.i.h.bf16 %v2630_v1  ;;  %v2631_v4 = vunpack.i.l.bf16 %v2630_v1 }
 0x8d6   : > { %v2660_v47 = vpop.eup %2659  ;;  %v2448_v8 = vpack.c.bf16 %v2632_v3, %v2631_v4 }
 0x8d7   : > { %v1384_v48 = vsel %vm911_vm5, %v2660_v47, 0.0  ;;  %v2662_v49 = vpop.eup %2661  ;;  %v1510_v9 = vpop.permute.xlu1 %1509 }
 0x8d8   : > { %1385 = vadd.xlane.f32.xlu0 %v1384_v48  ;;  %v1381_v18 = vsel %vm911_vm5, %v2662_v49, 0.0  ;;  %v1744_v48 = vld [vmem:[%s3338_s5 + $0x10] sm:$0xff] }
 0x8dc   : > { %1382 = vadd.xlane.f32.xlu0 %v1381_v18 }
 0x8f2   : > { %2614 = vrot.lane.b32.xlu0 %v3170_v6, %s2844_s28  ;;  %s2849_s28 = smov [#allocation11]  }
 0x8f6   : > { %1507 = vrot.lane.b32.xlu0 %v3112_v13, %s2845_s17 }
 0x965   : > { %v1386_v12 = vpop.xlane.xlu0 %1385 }
 0x969   : > { %v1383_v50 = vpop.xlane.xlu0 %1382 }
 0x96a   : > { %2663 = vrcp.f32 %v1383_v50 }
 0x96b   : > { %2665 = vrcp.f32 %v1386_v12 }
 0x96d   : > { %v2615_v53 = vpop.permute.xlu0 %2614 }
 0x96e   : > { %v2617_v54 = vunpack.i.h.bf16 %v2615_v53  ;;  %v2616_v55 = vunpack.i.l.bf16 %v2615_v53 }
 0x970   : > { %v2434_v61 = vpack.c.bf16 %v2617_v54, %v2616_v55  ;;  %v1852_v54 = vld [vmem:[%s3340_s7] sm:$0xff]  ;;  %v1853_v55 = vld [vmem:[%s3340_s7 + $0x8] sm:$0xff] }
 0x971   : > { %v1508_v7 = vpop.permute.xlu0 %1507  ;;  %v2470_v56 = vpack.c.bf16 %v1853_v55, %v1852_v54 }
 0x972   : > { %2435 = vmatprep.subr.bf16.mxu0 %v2434_v61 }
 0x973   : > { %2437 = vmatpush3.bf16.msra.mxu0 %v2434_v61 }
 0x974   : > { %v2664_v62 = vpop.eup %2663  ;;  %2439 = vmatprep.subr.bf16.mxu0 %v2438_v57 }
 0x975   : > { %v2666_v13 = vpop.eup %2665  ;;  %v1389_v0 = vmul.f32 %v2664_v62, %v2662_v49  ;;  %v1745_v49 = vld [vmem:[%s3338_s5 + $0x18] sm:$0xff] }
 0x976   : > { %v1390_v2 = vmul.f32 %v2666_v13, %v2660_v47  ;;  %v2462_v47 = vpack.c.bf16 %v1743_v46, %v1742_v45  ;;  %v2466_v18 = vpack.c.bf16 %v1745_v49, %v1744_v48 }
 0x977   : > { %2441 = vmatpush3.bf16.msra.mxu0 %v2438_v57  ;;  %2319 = vmatprep.mubr.msk.f32.mxu0 %vm911_vm5, %v1389_v0  ;;  %v2120_v57 = vld [vmem:[%s3339_s6] ss:$0 sm:$0xff] }
 0x978   : > { %2444 = vmatprep.subr.msk.bf16.mxu0 %vm3096_vm4, %v2442_v63 }
 0x97a   : > { %2320 = vmatmul.mubr.msk.f32.vlgmr.msra.gmra.mrb[6].mxu0 %vm911_vm5, %v1390_v2 }
 0x97b   : > { %2330 = vmatprep.mubr.msk.f32.mxu0 %vm817_vm3, %v1508_v7 }
 0x980   : > { %2447 = vmatpush3.bf16.xpose.msk.msra.mxu0 %vm3096_vm4, %v2442_v63 }
 0x981   : > { %2450 = vmatprep.subr.msk.bf16.mxu0 %vm3096_vm4, %v2448_v8 }
 0x988   : > { %2453 = vmatpush3.bf16.xpose.msk.msra.mxu0 %vm3096_vm4, %v2448_v8 }
 0x989   : > { %2471 = vmatprep.subr.bf16.mxu0 %v2470_v56 }
 0x98f   : > { %2331 = vmatmul.mubr.msk.f32.vlgmr.msra.gmra.mrb[8].mxu0 %vm817_vm3, %v1510_v9 }
 0x990   : > { %2473 = vmatpush3.bf16.msra.mxu0 %v2470_v56 }
 0xa4d   : > { %v2321_v10 = vpop.f32.mrb[6].mxu0 }
 0xa4e   : > { %v1479_v11 = vpop.f32.mrb[7].mxu0 }
 0xa62   : > { %v2332_v14 = vpop.f32.mrb[8].mxu0 }
 0xa63   : > { %v1601_v15 = vpop.f32.mrb[9].mxu0  ;;  %v1613_v16 = vsel %vm911_vm5, %v2332_v14, -inf }
 0xa64   : > { %1614 = vmax.xlane.f32.xlu1 %v1613_v16  ;;  %v1610_v17 = vsel %vm911_vm5, %v1601_v15, -inf }
 0xa65   : > { %1611 = vmax.xlane.f32.xlu0 %v1610_v17 }
 0xa75   : > { %2639 = vrot.lane.b32.xlu1 %v3156_v58, %s2845_s17 }
 0xa79   : > { %1249 = vrot.lane.b32.xlu1 %v3190_v36, %s2846_s26 }
 0xa7d   : > { %1251 = vrot.lane.b32.xlu1 %v3188_v35, %s2846_s26 }
 0xa81   : > { %1492 = vrot.lane.b32.xlu1 %v2321_v10, %s2847_s21 }
 0xaf1   : > { %v1615_v5 = vpop.xlane.xlu1 %1614 }
 0xaf2   : > { %v1617_v19 = vsub.f32 %v2332_v14, %v1615_v5  ;;  %v1612_v20 = vpop.xlane.xlu0 %1611 }
 0xaf3   : > { %v1616_v21 = vsub.f32 %v1601_v15, %v1612_v20  ;;  %v2123_v20 = vld [vmem:[%s3341_s8] ss:$0 sm:$0xff] }
 0xaf4   : > { %v1620_v22 = vmul.f32 1.442695, %v1617_v19 }
 0xaf5   : > { %v1618_v23 = vmul.f32 1.442695, %v1616_v21  ;;  %v2640_v24 = vpop.permute.xlu1 %2639 }
 0xaf6   : > { %2667 = vpow2.f32 %v1620_v22  ;;  %v2642_v34 = vunpack.i.h.bf16 %v2640_v24  ;;  %v2641_v35 = vunpack.i.l.bf16 %v2640_v24 }
 0xaf7   : > { %2669 = vpow2.f32 %v1618_v23 }
 0xaf8   : > { %v2458_v39 = vpack.c.bf16 %v2642_v34, %v2641_v35 }
 0xaf9   : > { %v1250_v58 = vpop.permute.xlu1 %1249 }
 0xafa   : > { %1256 = vst.msk [vmem:[#allocation5] sm:$0xff] %vm1255_vm6, %v1250_v58 }
 0xafd   : > { %v1252_v25 = vpop.permute.xlu1 %1251 }
 0xafe   : > { %1257 = vst.msk [vmem:[#allocation5 + $0x8] sm:$0xff] %vm1255_vm6, %v1252_v25 }
 0xb00   : > { %v2668_v26 = vpop.eup %2667 }
 0xb01   : > { %v1493_v27 = vpop.permute.xlu1 %1492  ;;  %v1625_v28 = vsel %vm911_vm5, %v2668_v26, 0.0  ;;  %v2670_v29 = vpop.eup %2669 }
 0xb02   : > { %1498 = vst.msk [vmem:[#allocation5 + $0x8] sm:$0xff] %vm1496_vm7, %v1493_v27  ;;  %1626 = vadd.xlane.f32.xlu0 %v1625_v28  ;;  %v1622_v30 = vsel %vm911_vm5, %v2670_v29, 0.0 }
 0xb06   : > { %1623 = vadd.xlane.f32.xlu0 %v1622_v30 }
 0xb1c   : > { %2634 = vrot.lane.b32.xlu0 %v3170_v6, %s2845_s17  ;;  %s2739_s17 = sshll.u32 %s2849_s28, 4  ;;  %s2740_s17 = int_to_ptr.vmem [resolvable:$false] %s2739_s17 }
 0xb1d   : > { %p2742_p5 = scmp.lt.s32.totalorder %s3272_s27, %s2740_s17 }
 0xb20   : > { %1490 = vrot.lane.b32.xlu0 %v1479_v11, %s2847_s21  ;;  %s2741_s21 = scalar_lea.vmem %s2740_s17, 512 }
 0xb21   : > { %p2743_p6 = scmp.lt.s32.totalorder %s2741_s21, %s2735_s13 }
 0xb23   : > { %p2744_p7 = por %p2743_p6, %p2742_p5 }
 0xb25   : > { %p2745_p9 = pnand %p2744_p7, %p2738_p4 }
 0xb8f   : > { %v1627_v31 = vpop.xlane.xlu0 %1626 }
 0xb93   : > { %v1624_v33 = vpop.xlane.xlu0 %1623 }
 0xb94   : > { %2671 = vrcp.f32 %v1624_v33 }
 0xb95   : > { %2673 = vrcp.f32 %v1627_v31 }
 0xb97   : > { %v2635_v36 = vpop.permute.xlu0 %2634 }
 0xb98   : > { %v2637_v37 = vunpack.i.h.bf16 %v2635_v36  ;;  %v2636_v38 = vunpack.i.l.bf16 %v2635_v36 }
 0xb9a   : > { %v2454_v40 = vpack.c.bf16 %v2637_v37, %v2636_v38 }
 0xb9b   : > { %v1491_v41 = vpop.permute.xlu0 %1490 }
 0xb9c   : > { %1497 = vst.msk [vmem:[#allocation5] sm:$0xff] %vm1496_vm7, %v1491_v41  ;;  %2455 = vmatprep.subr.bf16.mxu1 %v2454_v40 }
 0xb9d   : > { %2457 = vmatpush3.bf16.msra.mxu1 %v2454_v40 }
 0xb9e   : > { %v2672_v42 = vpop.eup %2671  ;;  %2459 = vmatprep.subr.bf16.mxu1 %v2458_v39 }
 0xb9f   : > { %v2674_v6 = vpop.eup %2673  ;;  %v1630_v43 = vmul.f32 %v2672_v42, %v2670_v29 }
 0xba0   : > { %v1631_v44 = vmul.f32 %v2674_v6, %v2668_v26 }
 0xba1   : > { %2461 = vmatpush3.bf16.msra.mxu1 %v2458_v39  ;;  %2341 = vmatprep.mubr.msk.f32.mxu1 %vm911_vm5, %v1630_v43 }
 0xba2   : > { %2463 = vmatprep.subr.bf16.mxu1 %v2462_v47 }
 0xba4   : > { %2342 = vmatmul.mubr.msk.f32.vlgmr.msra.gmra.mrb[6].mxu1 %vm911_vm5, %v1631_v44 }
 0xba5   : > { %2465 = vmatpush3.bf16.msra.mxu1 %v2462_v47 }
 0xba6   : > { %2467 = vmatprep.subr.bf16.mxu1 %v2466_v18 }
 0xba9   : > { %2469 = vmatpush3.bf16.msra.mxu1 %v2466_v18 }
 0xc77   : > { %v2343_v12 = vpop.f32.mrb[6].mxu1 }
 0xc78   : > { %1733 = vrot.lane.b32.xlu1 %v2343_v12, %s2848_s22  ;;  %v1720_v32 = vpop.f32.mrb[7].mxu1 }
 0xc79   : > { %1731 = vrot.lane.b32.xlu0 %v1720_v32, %s2848_s22 }
 0xcea   : > { %v1734_v50 = vpop.permute.xlu1 %1733 }
 0xceb   : > { %1739 = vst.msk [vmem:[#allocation5 + $0x8] sm:$0xff] %vm1737_vm8, %v1734_v50  ;;  %v1732_v51 = vpop.permute.xlu0 %1731 }
 0xcec   : > { %1738 = vst.msk [vmem:[#allocation5] sm:$0xff] %vm1737_vm8, %v1732_v51 }
 0xcf2   : > { %v1741_v53 = vld [vmem:[#allocation5 + $0x8] sm:$0xff] }
 0xcf3   : > { %v1740_v52 = vld [vmem:[#allocation5] sm:$0xff] }
 0xcf4   : > { %2352 = vmatprep.mubr.msk.f32.mxu1 %vm911_vm5, %v1740_v52 }
 0xcf5   : > { %2353 = vmatmul.mubr.msk.f32.vlgmr.msra.gmra.mrb[8].mxu1 %vm911_vm5, %v1741_v53 }
 0xdc8   : > { %v2354_v59 = vpop.f32.mrb[8].mxu1 }
 0xdc9   : > { %v1831_v60 = vadd.f32 %v2354_v59, %v2120_v57  ;;  %v1825_v61 = vpop.f32.mrb[9].mxu1 }
 0xdca   : > { %v1826_v62 = vadd.f32 %v2120_v57, %v1825_v61 }
 0xdcb   : > { %v1835_v63 = vmul.f32 %v1831_v60, %v1831_v60 }
 0xdcc   : > { %v1834_v13 = vmul.f32 %v1826_v62, %v1826_v62 }
 0xdcd   : > { %v1837_v0 = vmul.f32 %v1835_v63, %v1831_v60 }
 0xdce   : > { %v1836_v1 = vmul.f32 %v1834_v13, %v1826_v62 }
 0xdcf   : > { %v1839_v2 = vmul.f32 0.044715, %v1837_v0 }
 0xdd0   : > { %v1838_v3 = vmul.f32 0.044715, %v1836_v1 }
 0xdd1   : > { %v1841_v4 = vadd.f32 %v1839_v2, %v1831_v60 }
 0xdd2   : > { %v1840_v7 = vadd.f32 %v1838_v3, %v1826_v62 }
 0xdd3   : > { %v1843_v8 = vmul.f32 0.7978846, %v1841_v4 }
 0xdd4   : > { %v1842_v9 = vmul.f32 0.7978846, %v1840_v7 }
 0xdd5   : > { %2675 = vtanh.f32 %v1843_v8 }
 0xdd6   : > { %2677 = vtanh.f32 %v1842_v9 }
 0xddf   : > { %v2676_v10 = vpop.eup %2675 }
 0xde0   : > { %v2678_v11 = vpop.eup %2677  ;;  %v1847_v14 = vadd.f32 1.0, %v2676_v10 }
 0xde1   : > { %v1846_v15 = vadd.f32 1.0, %v2678_v11 }
 0xde2   : > { %v1849_v16 = vmul.f32 0.5, %v1847_v14 }
 0xde3   : > { %v1848_v17 = vmul.f32 0.5, %v1846_v15 }
 0xde4   : > { %v1851_v19 = vmul.f32 %v1849_v16, %v1831_v60 }
 0xde5   : > { %v1850_v5 = vmul.f32 %v1848_v17, %v1826_v62 }
 0xde7   : > { %2359 = vmatprep.mubr.msk.f32.mxu0 %vm727_vm2, %v1850_v5 }
 0xde8   : > { %2360 = vmatmul.mubr.msk.f32.vlgmr.msra.gmra.mrb[10].mxu0 %vm727_vm2, %v1851_v19 }
 0xebb   : > { %v2361_v21 = vpop.f32.mrb[10].mxu0 }
 0xebc   : > { %v1939_v22 = vadd.f32 %v2361_v21, %v2123_v20  ;;  %v1933_v23 = vpop.f32.mrb[11].mxu0 }
 0xebd   : > { %v1934_v24 = vadd.f32 %v2123_v20, %v1933_v23 }
 0xebe   : > { %1943 = vst.msk [vmem:[%s3048_s25 + $0x8] sm:$0xff] %vm911_vm5, %v1939_v22 }
 0xebf   : > { %1942 = vst.msk [vmem:[%s3048_s25] sm:$0xff] %vm911_vm5, %v1934_v24 }
 0xec0   : > { %2748 = shalt.err (!%p2745_p9)
}
 0xec1   : > { %s2749_s30 = scalar_lea.hbm %s3270_s20, 256  ;;  %s2753_s14 = scalar_lea.hbm %s3342_s9, 1024 }
 0xec2   : > { %p2750_p11 = scmp.ne.s32.totalorder %s3270_s20, %s2749_s30  ;;  %p2754_p8 = scmp.lt.u32.totalorder %s3270_s20, %s3342_s9 }
 0xec3   : > { %p2755_p0 = scmp.lt.u32.totalorder %s2753_s14, %s2749_s30  ;;  %p2757_p10 = scmp.lt.u32.totalorder %s2749_s30, %s3270_s20 }
 0xec4   : > { %p2751_p13 = pnand %p2750_p11, %p3374_p12 }
 0xec5   : > { %p2756_p2 = por %p2755_p0, %p2754_p8 }
 0xec6   : > { %p2752_p3 = pneg %p2751_p13 }
 0xec7   : > { %p2758_p1 = por %p2757_p10, %p2756_p2 }
 0xec9   : > { %p2759_p4 = pnand %p2758_p1, %p2752_p3 }
 0xecb   : > { %2762 = shalt.err (!%p2759_p4)
}
 0xecc   : > { %s2850_s29 = smov 128  }
 0xecd   : > { %2482 = dma.vmem_to_hbm [thread:$0]  (%p3374_p12), %s3272_s27, 256, %s3270_s20, %s3280_s12, %s2850_s29, %s2850_s29, %s2846_s26  }
 0xece PF: > { %s3375_s11 = sld [smem:[#allocation19_spill]]  ;;  %s3376_s16 = sld [smem:[#allocation15_spill]] }
 0xecf   : > { %s3377_s22 = sld [smem:[#allocation22_spill]] }
 0xed4   : > { %p2499_p5 = scmp.ge.s32.totalorder %s3375_s11, 2  ;;  %s1975_s15 = sand.u32 1, %s3376_s16  }
 0xed5   : > { %p3378_p6 = scmp.ne.s32.totalorder %s3377_s22, 0  ;;  %s1976_s13 = scalar_lea.sflag [#allocation8], %s1975_s15 }
 0xed7   : > { %p2492_p7 = pnand %p2499_p5, %p3378_p6 }
 0xed9   : > { %2804 = dma.done.wait (!%p2492_p7), %s1976_s13, 256  }
 0xeda   : > { %2806 = vsyncadd (!%p2492_p7), %s1976_s13, 4294967040  ;;  %s24_s16 = sadd.s32 1, %s3375_s11   ;;  %s3379_s23 = sld [smem:[#allocation16_spill]] }
 0xedb   : > { %p21_p9 = scmp.ge.s32.totalorder %s24_s16, 6   ;;  %s3380_s11 = sld [smem:[#allocation23_spill]] }
 0xedc   : > { %s3381_s12 = sld [smem:[#allocation17_spill]]  ;;  %s3382_s13 = sld [smem:[#allocation18_spill]] }
 0xedd   : > { %s3383_s14 = sld [smem:[#allocation20_spill]]  ;;  %s3384_s15 = sld [smem:[#allocation21_spill]] }
 0xede   : > { %s3385_s30 = smov %s2813_s10  ;;  %23 = sbr.rel (!%p21_p9) target bundleno = 7 (0x7), region = 105 }
 0xee0   : > { %s3386_s10 = smov %s3379_s23 }
 0xee5   :  { %1981 = vsyncpa [#allocation7], 1 }
 0xee6   :  { %1983 = vsyncpa [#allocation7 + $0x1], 1 }
 0xee7   :  { %1984 = vsyncpa [#allocation10], 1 }
 0xee8   :  { %1985 = vsyncpa [#allocation8], 1 }
 0xee9   :  { %1987 = vsyncpa [#allocation8 + $0x1], 1 }

</bundles_post_ra>
